<compile_context>
chip_gen: v7x
topology: tpu7x:2x2x1
jax: 0.10.0
libtpu: 0.0.40
codegen_flags: <defaults>
</compile_context>

<pallas_src>
import functools

import jax
import jax.numpy as jnp
from jax.experimental import pallas as pl
from jax.experimental.pallas import tpu as pltpu

_LOGIT_LANES = 128  # fc2 output padded to one full vreg of lanes


# ------------------------------ fused kernel ------------------------------- #

def _fused_cnn_kernel(x_ref, a1_ref, s1_ref, b1_ref, a2_ref, s2_ref, b2_ref,
                      g1_ref, g1b_ref, g2_ref, g2b_ref, o_ref,
                      p_even_ref, p_odd_ref):
    """Whole SimpleCNN forward for one batch tile, entirely in VMEM.

    x_ref      : (bt, 20, 18) f32   padded 16x16 input; row (r*5 + t) holds padded row 4*t+r
    a1_ref     : (3, 18, 256)       conv1 taps as banded matrices, lanes = (w%2)*128+(w//2)*16+c
    s1/b1_ref  : (1, 256) f32       folded BN1 scale / bias (conv bias included)
    a2_ref     : (384, 256)         conv2 taps, rows = dy*128 + w_in*16 + cin,
                                    lanes = (u%2)*128 + (u//2)*32 + cout
    s2/b2_ref  : (1, 256) f32       folded BN2 scale / bias
    g1_ref     : (512, 64)          fc1 weights permuted to the kernel's (go, uo, co) flatten
    g1b_ref    : (1, 64) f32
    g2_ref     : (64, 128)          fc2 weights, class dim zero-padded to 128 lanes
    g2b_ref    : (1, 128) f32
    o_ref      : (bt, 128) f32      logits (first num_classes lanes are real)
    p_even/odd : (bt, 5, 128) f32   VMEM scratch: pooled conv1 rows of even/odd height parity
                                    plus one zero halo row for conv2's vertical padding.
    """
    bt = x_ref.shape[0]
    mm_dtype = a1_ref.dtype

    # ---------- stage 1: conv1(3x3, 1->16) + BN + ReLU + 2x2 max-pool ----------
    def conv1_pooled_w(q1, q):
        # conv1+bn+relu output rows h = 4*ho2 + 2*q1 + q (ho2 = 0..3), max-pooled over w.
        acc = jnp.zeros((bt * 4, 256), jnp.float32)
        for dy in range(3):
            m = 2 * q1 + q + dy                      # padded input row = 4*ho2 + m
            r, t0 = m % 4, m // 4
            tap = x_ref[:, r * 5 + t0:r * 5 + t0 + 4, :].reshape(bt * 4, 18)
            acc = acc + jnp.dot(tap.astype(mm_dtype), a1_ref[dy],
                                preferred_element_type=jnp.float32)
        y = jnp.maximum(acc * s1_ref[...] + b1_ref[...], 0.0)
        return jnp.maximum(y[:, :128], y[:, 128:])   # pool over w-parity -> (bt*4, 128)

    zero_row = jnp.zeros((bt, 1, 128), jnp.float32)
    # pooled rows ho = 2*ho2 (even parity): zero halo row at the bottom (ho = 8)
    p0 = jnp.maximum(conv1_pooled_w(0, 0), conv1_pooled_w(0, 1))
    p_even_ref[:, 0:4, :] = p0.reshape(bt, 4, 128)
    p_even_ref[:, 4:5, :] = zero_row
    # pooled rows ho = 2*ho2 + 1 (odd parity): zero halo row at the top (ho = -1)
    p1 = jnp.maximum(conv1_pooled_w(1, 0), conv1_pooled_w(1, 1))
    p_odd_ref[:, 1:5, :] = p1.reshape(bt, 4, 128)
    p_odd_ref[:, 0:1, :] = zero_row

    # ---------- stage 2: conv2(3x3, 16->32) + BN + ReLU + 2x2 max-pool ----------
    def conv2_pooled_w(q2):
        # conv2+bn+relu output rows g = 2*go + q2 (go = 0..3), max-pooled over u.
        taps = []
        for dy in range(3):
            m = q2 + dy - 1                          # pooled-conv1 row = 2*go + m
            src = p_even_ref if m % 2 == 0 else p_odd_ref
            a = (m + 1) // 2
            taps.append(src[:, a:a + 4, :].reshape(bt * 4, 128))
        lhs = jnp.concatenate(taps, axis=1).astype(mm_dtype)       # (bt*4, 384)
        y = jnp.dot(lhs, a2_ref[...], preferred_element_type=jnp.float32)
        y = jnp.maximum(y * s2_ref[...] + b2_ref[...], 0.0)
        return jnp.maximum(y[:, :128], y[:, 128:])   # pool over u-parity -> (bt*4, 128)

    feat = jnp.maximum(conv2_pooled_w(0), conv2_pooled_w(1))       # (bt*4, 128)
    # feat rows = (b, go), lanes = uo*32 + co  == the 4x4x32 map (AdaptiveAvgPool is identity)

    # ---------- classifier: Linear(512,64) + ReLU + Linear(64, 10 padded to 128) ----------
    f3 = feat.reshape(bt, 4, 128)
    flat = jnp.concatenate([f3[:, go, :] for go in range(4)], axis=1)   # (bt, 512)
    h = jnp.dot(flat.astype(mm_dtype), g1_ref[...],
                preferred_element_type=jnp.float32) + g1b_ref[...]
    h = jnp.maximum(h, 0.0)
    logits = jnp.dot(h.astype(mm_dtype), g2_ref[...],
                     preferred_element_type=jnp.float32) + g2b_ref[...]
    o_ref[...] = logits.astype(o_ref.dtype)


# ----------------------------- host-side glue ------------------------------ #

def _round_up(v, m):
    return (v + m - 1) // m * m


def _prepare_input(x_nchw):
    """(N,1,16,16) NCHW -> (N, 20, 18) f32.

    Zero-pads the 16x16 image to 18x18 (conv padding) plus two extra zero rows, then
    regroups rows by (padded_row mod 4) so both levels of 2x2 max-pooling reduce over
    contiguous row groups inside the kernel.  Output row index = (h%4)*5 + h//4.
    """
    n = x_nchw.shape[0]
    x = x_nchw[:, 0, :, :].astype(jnp.float32)
    xpad = jnp.pad(x, ((0, 0), (1, 3), (1, 1)))                # (n, 20, 18), rows 17..19 zero
    xq = xpad.reshape(n, 5, 4, 18).transpose(0, 2, 1, 3)       # [n, r, t] = padded row 4*t+r
    return xq.reshape(n, 20, 18)


def prepare_params(p, num_classes=10, matmul_dtype=jnp.bfloat16, eps=1e-5):
    """One-time packing of PyTorch-style parameters into kernel operands.

    Folds eval-mode BatchNorm into per-channel scale/bias, turns each 3x3 conv into banded
    matmul matrices matching the kernel's (w-parity, w, channel) lane packing, permutes
    fc1's columns to the kernel's flatten order and pads fc2 to 128 output lanes.  Matmul
    operands are stored in `matmul_dtype` (bf16 by default; the kernel accumulates in f32).
    """
    f32 = jnp.float32
    md = matmul_dtype

    scale1 = p["bn1_gamma"] / jnp.sqrt(p["bn1_var"] + eps)
    bias1 = p["bn1_beta"] - p["bn1_mean"] * scale1 + p["conv1_b"] * scale1
    scale2 = p["bn2_gamma"] / jnp.sqrt(p["bn2_var"] + eps)
    bias2 = p["bn2_beta"] - p["bn2_mean"] * scale2 + p["conv2_b"] * scale2

    # conv1 -> a1[dy, wp, s*128 + wo*16 + c] = W1[c, 0, dy, wp - (2*wo + s)]
    w1 = p["conv1_w"][:, 0, :, :]                                   # (16, 3, 3)
    dy = jnp.arange(3)[:, None, None, None, None]
    wp = jnp.arange(18)[None, :, None, None, None]
    s = jnp.arange(2)[None, None, :, None, None]
    wo = jnp.arange(8)[None, None, None, :, None]
    c = jnp.arange(16)[None, None, None, None, :]
    dx = wp - (2 * wo + s)
    vals = w1[c, dy, jnp.clip(dx, 0, 2)]
    a1 = jnp.where((dx >= 0) & (dx <= 2), vals, 0.0).reshape(3, 18, 256)
    s1p = jnp.tile(scale1, 16).reshape(1, 256).astype(f32)
    b1p = jnp.tile(bias1, 16).reshape(1, 256).astype(f32)

    # conv2 -> a2[dy*128 + w_in*16 + ci, s2*128 + uo*32 + co] = W2[co, ci, dy, w_in-(2*uo+s2)+1]
    w2 = p["conv2_w"]                                               # (32, 16, 3, 3)
    dy2 = jnp.arange(3)[:, None, None, None, None, None]
    wi = jnp.arange(8)[None, :, None, None, None, None]
    ci = jnp.arange(16)[None, None, :, None, None, None]
    s2 = jnp.arange(2)[None, None, None, :, None, None]
    uo = jnp.arange(4)[None, None, None, None, :, None]
    co = jnp.arange(32)[None, None, None, None, None, :]
    dx2 = wi - (2 * uo + s2) + 1
    vals2 = w2[co, ci, dy2, jnp.clip(dx2, 0, 2)]
    a2 = jnp.where((dx2 >= 0) & (dx2 <= 2), vals2, 0.0).reshape(384, 256)
    s2p = jnp.tile(scale2, 8).reshape(1, 256).astype(f32)
    b2p = jnp.tile(bias2, 8).reshape(1, 256).astype(f32)

    # fc1: permute columns from PyTorch's (c, h, w) flatten to the kernel's (go, uo, co) order
    go = jnp.arange(4)[:, None, None, None]
    uo1 = jnp.arange(4)[None, :, None, None]
    co1 = jnp.arange(32)[None, None, :, None]
    k = jnp.arange(64)[None, None, None, :]
    g1 = p["fc1_w"][k, co1 * 16 + go * 4 + uo1].reshape(512, 64)
    g1b = p["fc1_b"].reshape(1, 64).astype(f32)

    # fc2: transpose and pad the class dim 10 -> 128 lanes (sliced back outside the kernel)
    g2 = jnp.zeros((64, _LOGIT_LANES), f32).at[:, :num_classes].set(p["fc2_w"].T)
    g2b = jnp.zeros((1, _LOGIT_LANES), f32).at[:, :num_classes].set(p["fc2_b"][None, :])

    return (a1.astype(md), s1p, b1p, a2.astype(md), s2p, b2p,
            g1.astype(md), g1b, g2.astype(md), g2b)


def simple_cnn_forward(x_nchw, packed, num_classes=10, block_n=128):
    """SimpleCNN forward. x_nchw: (N, 1, 16, 16) float32 (PyTorch layout), packed = prepare_params(...)."""
    assert x_nchw.shape[1:] == (1, 16, 16), x_nchw.shape
    assert num_classes <= _LOGIT_LANES
    n = x_nchw.shape[0]

    xprep = _prepare_input(x_nchw)                                  # (n, 20, 18) f32

    bn = max(8, min(_round_up(block_n, 8), _round_up(n, 8)))        # batch tile (rows of work)
    n_pad = _round_up(n, bn)
    if n_pad != n:
        xprep = jnp.pad(xprep, ((0, n_pad - n), (0, 0), (0, 0)))

    def wspec(shape):
        return pl.BlockSpec(shape, lambda i, s=shape: (0,) * len(s))

    out = pl.pallas_call(
        _fused_cnn_kernel,
        out_shape=jax.ShapeDtypeStruct((n_pad, _LOGIT_LANES), jnp.float32),
        grid=(n_pad // bn,),
        in_specs=[
            pl.BlockSpec((bn, 20, 18), lambda i: (i, 0, 0)),        # input batch tile
            wspec((3, 18, 256)), wspec((1, 256)), wspec((1, 256)),  # conv1 / bn1
            wspec((384, 256)), wspec((1, 256)), wspec((1, 256)),    # conv2 / bn2
            wspec((512, 64)), wspec((1, 64)),                       # fc1
            wspec((64, _LOGIT_LANES)), wspec((1, _LOGIT_LANES)),    # fc2 (padded)
        ],
        out_specs=pl.BlockSpec((bn, _LOGIT_LANES), lambda i: (i, 0)),
        scratch_shapes=[pltpu.VMEM((bn, 5, 128), jnp.float32),      # pooled conv1, even rows
                        pltpu.VMEM((bn, 5, 128), jnp.float32)],     # pooled conv1, odd rows
        compiler_params=pltpu.CompilerParams(dimension_semantics=("parallel",)),
    )(xprep, *packed)

    return out[:n, :num_classes]


# ------------------------------ parameters --------------------------------- #

def init_params(key, num_classes=10):
    """Deterministic PyTorch-layout parameters (same layout as nn.Module state_dict)."""
    ks = jax.random.split(key, 16)
    p = {}
    p["conv1_w"] = 0.1 * jax.random.normal(ks[0], (16, 1, 3, 3), jnp.float32)
    p["conv1_b"] = 0.1 * jax.random.normal(ks[1], (16,), jnp.float32)
    p["bn1_gamma"] = 1.0 + 0.1 * jax.random.normal(ks[2], (16,), jnp.float32)
    p["bn1_beta"] = 0.1 * jax.random.normal(ks[3], (16,), jnp.float32)
    p["bn1_mean"] = 0.1 * jax.random.normal(ks[4], (16,), jnp.float32)
    p["bn1_var"] = 1.0 + 0.1 * jnp.abs(jax.random.normal(ks[5], (16,), jnp.float32))
    p["conv2_w"] = 0.1 * jax.random.normal(ks[6], (32, 16, 3, 3), jnp.float32)
    p["conv2_b"] = 0.1 * jax.random.normal(ks[7], (32,), jnp.float32)
    p["bn2_gamma"] = 1.0 + 0.1 * jax.random.normal(ks[8], (32,), jnp.float32)
    p["bn2_beta"] = 0.1 * jax.random.normal(ks[9], (32,), jnp.float32)
    p["bn2_mean"] = 0.1 * jax.random.normal(ks[10], (32,), jnp.float32)
    p["bn2_var"] = 1.0 + 0.1 * jnp.abs(jax.random.normal(ks[11], (32,), jnp.float32))
    p["fc1_w"] = 0.05 * jax.random.normal(ks[12], (64, 32 * 4 * 4), jnp.float32)
    p["fc1_b"] = 0.05 * jax.random.normal(ks[13], (64,), jnp.float32)
    p["fc2_w"] = 0.05 * jax.random.normal(ks[14], (num_classes, 64), jnp.float32)
    p["fc2_b"] = 0.05 * jax.random.normal(ks[15], (num_classes,), jnp.float32)
    return p


if __name__ == "__main__":
    key = jax.random.PRNGKey(0)
    k_param, k_x = jax.random.split(key)
    params = init_params(k_param, num_classes=10)
    packed = prepare_params(params, num_classes=10)        # one-time weight prepack (bf16 matmul operands)
    x = jax.random.normal(k_x, (2, 1, 16, 16), jnp.float32)  # NCHW, like PyTorch

    fwd = jax.jit(functools.partial(simple_cnn_forward, num_classes=10))
    out = jax.block_until_ready(fwd(x, packed))

    assert out.shape == (2, 10), out.shape
    assert bool(jnp.all(jnp.isfinite(out)))
    print("KERNEL_OK")
</pallas_src>

<mosaic_0001>
module attributes {stable_mosaic.version = 11 : i64} {
  func.func @_fused_cnn_kernel(%arg0: i32, %arg1: memref<8x20x18xf32, #tpu.memory_space<vmem>>, %arg2: memref<3x18x256xbf16, #tpu.memory_space<vmem>>, %arg3: memref<1x256xf32, #tpu.memory_space<vmem>>, %arg4: memref<1x256xf32, #tpu.memory_space<vmem>>, %arg5: memref<384x256xbf16, #tpu.memory_space<vmem>>, %arg6: memref<1x256xf32, #tpu.memory_space<vmem>>, %arg7: memref<1x256xf32, #tpu.memory_space<vmem>>, %arg8: memref<512x64xbf16, #tpu.memory_space<vmem>>, %arg9: memref<1x64xf32, #tpu.memory_space<vmem>>, %arg10: memref<64x128xbf16, #tpu.memory_space<vmem>>, %arg11: memref<1x128xf32, #tpu.memory_space<vmem>>, %arg12: memref<8x128xf32, #tpu.memory_space<vmem>>, %arg13: memref<8x5x128xf32, #tpu.memory_space<vmem>>, %arg14: memref<8x5x128xf32, #tpu.memory_space<vmem>>) attributes {dimension_semantics = [#tpu.dimension_semantics<parallel>], iteration_bounds = array<i64: 1>, scalar_prefetch = 0 : i64, scratch_operands = 2 : i64, tpu.core_type = #tpu.core_type<tc>, window_params = [{transform_indices = @transform_0, window_bounds = array<i64: 8, 20, 18>}, {pipeline_mode = #tpu.pipeline_mode<synchronous>, transform_indices = @transform_1, window_bounds = array<i64: 3, 18, 256>}, {pipeline_mode = #tpu.pipeline_mode<synchronous>, transform_indices = @transform_2, window_bounds = array<i64: 1, 256>}, {pipeline_mode = #tpu.pipeline_mode<synchronous>, transform_indices = @transform_3, window_bounds = array<i64: 1, 256>}, {pipeline_mode = #tpu.pipeline_mode<synchronous>, transform_indices = @transform_4, window_bounds = array<i64: 384, 256>}, {pipeline_mode = #tpu.pipeline_mode<synchronous>, transform_indices = @transform_5, window_bounds = array<i64: 1, 256>}, {pipeline_mode = #tpu.pipeline_mode<synchronous>, transform_indices = @transform_6, window_bounds = array<i64: 1, 256>}, {pipeline_mode = #tpu.pipeline_mode<synchronous>, transform_indices = @transform_7, window_bounds = array<i64: 512, 64>}, {pipeline_mode = #tpu.pipeline_mode<synchronous>, transform_indices = @transform_8, window_bounds = array<i64: 1, 64>}, {pipeline_mode = #tpu.pipeline_mode<synchronous>, transform_indices = @transform_9, window_bounds = array<i64: 64, 128>}, {pipeline_mode = #tpu.pipeline_mode<synchronous>, transform_indices = @transform_10, window_bounds = array<i64: 1, 128>}, {transform_indices = @transform_11, window_bounds = array<i64: 8, 128>}]} {
    %cst = arith.constant 0.000000e+00 : f32
    %0 = vector.broadcast %cst : f32 to vector<8x1x128xf32>
    %cst_0 = arith.constant 0.000000e+00 : f32
    %1 = vector.broadcast %cst_0 : f32 to vector<32x256xf32>
    %c0 = arith.constant 0 : index
    %c0_1 = arith.constant 0 : index
    %c0_2 = arith.constant 0 : index
    %2 = vector.load %arg1[%c0, %c0_1, %c0_2] : memref<8x20x18xf32, #tpu.memory_space<vmem>>, vector<8x4x18xf32>
    %3 = vector.shape_cast %2 : vector<8x4x18xf32> to vector<32x18xf32>
    %4 = arith.truncf %3 : vector<32x18xf32> to vector<32x18xbf16>
    %c0_3 = arith.constant 0 : index
    %c0_4 = arith.constant 0 : index
    %c0_5 = arith.constant 0 : index
    %5 = vector.load %arg2[%c0_3, %c0_4, %c0_5] : memref<3x18x256xbf16, #tpu.memory_space<vmem>>, vector<1x18x256xbf16>
    %6 = vector.shape_cast %5 : vector<1x18x256xbf16> to vector<18x256xbf16>
    %cst_6 = arith.constant dense<0.000000e+00> : vector<32x256xf32>
    %7 = tpu.matmul %4, %6, %cst_6 {dimension_numbers = #tpu.dot_dimension_numbers<[1], [0], [0], [1], [0, 0, 1, 1], [], []>} : vector<32x18xbf16>, vector<18x256xbf16>, vector<32x256xf32> -> vector<32x256xf32>
    %8 = arith.addf %1, %7 : vector<32x256xf32>
    %c0_7 = arith.constant 0 : index
    %c5 = arith.constant 5 : index
    %c0_8 = arith.constant 0 : index
    %9 = vector.load %arg1[%c0_7, %c5, %c0_8] : memref<8x20x18xf32, #tpu.memory_space<vmem>>, vector<8x4x18xf32>
    %10 = vector.shape_cast %9 : vector<8x4x18xf32> to vector<32x18xf32>
    %11 = arith.truncf %10 : vector<32x18xf32> to vector<32x18xbf16>
    %c1 = arith.constant 1 : index
    %c0_9 = arith.constant 0 : index
    %c0_10 = arith.constant 0 : index
    %12 = vector.load %arg2[%c1, %c0_9, %c0_10] : memref<3x18x256xbf16, #tpu.memory_space<vmem>>, vector<1x18x256xbf16>
    %13 = vector.shape_cast %12 : vector<1x18x256xbf16> to vector<18x256xbf16>
    %cst_11 = arith.constant dense<0.000000e+00> : vector<32x256xf32>
    %14 = tpu.matmul %11, %13, %cst_11 {dimension_numbers = #tpu.dot_dimension_numbers<[1], [0], [0], [1], [0, 0, 1, 1], [], []>} : vector<32x18xbf16>, vector<18x256xbf16>, vector<32x256xf32> -> vector<32x256xf32>
    %15 = arith.addf %8, %14 : vector<32x256xf32>
    %c0_12 = arith.constant 0 : index
    %c10 = arith.constant 10 : index
    %c0_13 = arith.constant 0 : index
    %16 = vector.load %arg1[%c0_12, %c10, %c0_13] : memref<8x20x18xf32, #tpu.memory_space<vmem>>, vector<8x4x18xf32>
    %17 = vector.shape_cast %16 : vector<8x4x18xf32> to vector<32x18xf32>
    %18 = arith.truncf %17 : vector<32x18xf32> to vector<32x18xbf16>
    %c2 = arith.constant 2 : index
    %c0_14 = arith.constant 0 : index
    %c0_15 = arith.constant 0 : index
    %19 = vector.load %arg2[%c2, %c0_14, %c0_15] : memref<3x18x256xbf16, #tpu.memory_space<vmem>>, vector<1x18x256xbf16>
    %20 = vector.shape_cast %19 : vector<1x18x256xbf16> to vector<18x256xbf16>
    %cst_16 = arith.constant dense<0.000000e+00> : vector<32x256xf32>
    %21 = tpu.matmul %18, %20, %cst_16 {dimension_numbers = #tpu.dot_dimension_numbers<[1], [0], [0], [1], [0, 0, 1, 1], [], []>} : vector<32x18xbf16>, vector<18x256xbf16>, vector<32x256xf32> -> vector<32x256xf32>
    %22 = arith.addf %15, %21 : vector<32x256xf32>
    %c0_17 = arith.constant 0 : index
    %c0_18 = arith.constant 0 : index
    %23 = vector.load %arg3[%c0_17, %c0_18] : memref<1x256xf32, #tpu.memory_space<vmem>>, vector<1x256xf32>
    %24 = vector.broadcast %23 : vector<1x256xf32> to vector<32x256xf32>
    %25 = arith.mulf %22, %24 : vector<32x256xf32>
    %c0_19 = arith.constant 0 : index
    %c0_20 = arith.constant 0 : index
    %26 = vector.load %arg4[%c0_19, %c0_20] : memref<1x256xf32, #tpu.memory_space<vmem>>, vector<1x256xf32>
    %27 = vector.broadcast %26 : vector<1x256xf32> to vector<32x256xf32>
    %28 = arith.addf %25, %27 : vector<32x256xf32>
    %cst_21 = arith.constant 0.000000e+00 : f32
    %29 = vector.broadcast %cst_21 : f32 to vector<32x256xf32>
    %30 = arith.maximumf %28, %29 : vector<32x256xf32>
    %31 = vector.extract_strided_slice %30 {offsets = [0, 0], sizes = [32, 128], strides = [1, 1]} : vector<32x256xf32> to vector<32x128xf32>
    %32 = vector.extract_strided_slice %30 {offsets = [0, 128], sizes = [32, 128], strides = [1, 1]} : vector<32x256xf32> to vector<32x128xf32>
    %33 = arith.maximumf %31, %32 : vector<32x128xf32>
    %cst_22 = arith.constant 0.000000e+00 : f32
    %34 = vector.broadcast %cst_22 : f32 to vector<32x256xf32>
    %c0_23 = arith.constant 0 : index
    %c5_24 = arith.constant 5 : index
    %c0_25 = arith.constant 0 : index
    %35 = vector.load %arg1[%c0_23, %c5_24, %c0_25] : memref<8x20x18xf32, #tpu.memory_space<vmem>>, vector<8x4x18xf32>
    %36 = vector.shape_cast %35 : vector<8x4x18xf32> to vector<32x18xf32>
    %37 = arith.truncf %36 : vector<32x18xf32> to vector<32x18xbf16>
    %c0_26 = arith.constant 0 : index
    %c0_27 = arith.constant 0 : index
    %c0_28 = arith.constant 0 : index
    %38 = vector.load %arg2[%c0_26, %c0_27, %c0_28] : memref<3x18x256xbf16, #tpu.memory_space<vmem>>, vector<1x18x256xbf16>
    %39 = vector.shape_cast %38 : vector<1x18x256xbf16> to vector<18x256xbf16>
    %cst_29 = arith.constant dense<0.000000e+00> : vector<32x256xf32>
    %40 = tpu.matmul %37, %39, %cst_29 {dimension_numbers = #tpu.dot_dimension_numbers<[1], [0], [0], [1], [0, 0, 1, 1], [], []>} : vector<32x18xbf16>, vector<18x256xbf16>, vector<32x256xf32> -> vector<32x256xf32>
    %41 = arith.addf %34, %40 : vector<32x256xf32>
    %c0_30 = arith.constant 0 : index
    %c10_31 = arith.constant 10 : index
    %c0_32 = arith.constant 0 : index
    %42 = vector.load %arg1[%c0_30, %c10_31, %c0_32] : memref<8x20x18xf32, #tpu.memory_space<vmem>>, vector<8x4x18xf32>
    %43 = vector.shape_cast %42 : vector<8x4x18xf32> to vector<32x18xf32>
    %44 = arith.truncf %43 : vector<32x18xf32> to vector<32x18xbf16>
    %c1_33 = arith.constant 1 : index
    %c0_34 = arith.constant 0 : index
    %c0_35 = arith.constant 0 : index
    %45 = vector.load %arg2[%c1_33, %c0_34, %c0_35] : memref<3x18x256xbf16, #tpu.memory_space<vmem>>, vector<1x18x256xbf16>
    %46 = vector.shape_cast %45 : vector<1x18x256xbf16> to vector<18x256xbf16>
    %cst_36 = arith.constant dense<0.000000e+00> : vector<32x256xf32>
    %47 = tpu.matmul %44, %46, %cst_36 {dimension_numbers = #tpu.dot_dimension_numbers<[1], [0], [0], [1], [0, 0, 1, 1], [], []>} : vector<32x18xbf16>, vector<18x256xbf16>, vector<32x256xf32> -> vector<32x256xf32>
    %48 = arith.addf %41, %47 : vector<32x256xf32>
    %c0_37 = arith.constant 0 : index
    %c15 = arith.constant 15 : index
    %c0_38 = arith.constant 0 : index
    %49 = vector.load %arg1[%c0_37, %c15, %c0_38] : memref<8x20x18xf32, #tpu.memory_space<vmem>>, vector<8x4x18xf32>
    %50 = vector.shape_cast %49 : vector<8x4x18xf32> to vector<32x18xf32>
    %51 = arith.truncf %50 : vector<32x18xf32> to vector<32x18xbf16>
    %c2_39 = arith.constant 2 : index
    %c0_40 = arith.constant 0 : index
    %c0_41 = arith.constant 0 : index
    %52 = vector.load %arg2[%c2_39, %c0_40, %c0_41] : memref<3x18x256xbf16, #tpu.memory_space<vmem>>, vector<1x18x256xbf16>
    %53 = vector.shape_cast %52 : vector<1x18x256xbf16> to vector<18x256xbf16>
    %cst_42 = arith.constant dense<0.000000e+00> : vector<32x256xf32>
    %54 = tpu.matmul %51, %53, %cst_42 {dimension_numbers = #tpu.dot_dimension_numbers<[1], [0], [0], [1], [0, 0, 1, 1], [], []>} : vector<32x18xbf16>, vector<18x256xbf16>, vector<32x256xf32> -> vector<32x256xf32>
    %55 = arith.addf %48, %54 : vector<32x256xf32>
    %c0_43 = arith.constant 0 : index
    %c0_44 = arith.constant 0 : index
    %56 = vector.load %arg3[%c0_43, %c0_44] : memref<1x256xf32, #tpu.memory_space<vmem>>, vector<1x256xf32>
    %57 = vector.broadcast %56 : vector<1x256xf32> to vector<32x256xf32>
    %58 = arith.mulf %55, %57 : vector<32x256xf32>
    %c0_45 = arith.constant 0 : index
    %c0_46 = arith.constant 0 : index
    %59 = vector.load %arg4[%c0_45, %c0_46] : memref<1x256xf32, #tpu.memory_space<vmem>>, vector<1x256xf32>
    %60 = vector.broadcast %59 : vector<1x256xf32> to vector<32x256xf32>
    %61 = arith.addf %58, %60 : vector<32x256xf32>
    %cst_47 = arith.constant 0.000000e+00 : f32
    %62 = vector.broadcast %cst_47 : f32 to vector<32x256xf32>
    %63 = arith.maximumf %61, %62 : vector<32x256xf32>
    %64 = vector.extract_strided_slice %63 {offsets = [0, 0], sizes = [32, 128], strides = [1, 1]} : vector<32x256xf32> to vector<32x128xf32>
    %65 = vector.extract_strided_slice %63 {offsets = [0, 128], sizes = [32, 128], strides = [1, 1]} : vector<32x256xf32> to vector<32x128xf32>
    %66 = arith.maximumf %64, %65 : vector<32x128xf32>
    %67 = arith.maximumf %33, %66 : vector<32x128xf32>
    %68 = vector.shape_cast %67 : vector<32x128xf32> to vector<8x4x128xf32>
    %c0_48 = arith.constant 0 : index
    %c0_49 = arith.constant 0 : index
    %c0_50 = arith.constant 0 : index
    %69 = vector.load %arg13[%c0_48, %c0_49, %c0_50] : memref<8x5x128xf32, #tpu.memory_space<vmem>>, vector<8x4x128xf32>
    tpu.vector_store %arg13[%c0_48, %c0_49, %c0_50], %68 {strides = array<i32>} : memref<8x5x128xf32, #tpu.memory_space<vmem>>, vector<8x4x128xf32>,
    %c0_51 = arith.constant 0 : index
    %c4 = arith.constant 4 : index
    %c0_52 = arith.constant 0 : index
    %70 = vector.load %arg13[%c0_51, %c4, %c0_52] : memref<8x5x128xf32, #tpu.memory_space<vmem>>, vector<8x1x128xf32>
    tpu.vector_store %arg13[%c0_51, %c4, %c0_52], %0 {strides = array<i32>} : memref<8x5x128xf32, #tpu.memory_space<vmem>>, vector<8x1x128xf32>,
    %cst_53 = arith.constant 0.000000e+00 : f32
    %71 = vector.broadcast %cst_53 : f32 to vector<32x256xf32>
    %c0_54 = arith.constant 0 : index
    %c10_55 = arith.constant 10 : index
    %c0_56 = arith.constant 0 : index
    %72 = vector.load %arg1[%c0_54, %c10_55, %c0_56] : memref<8x20x18xf32, #tpu.memory_space<vmem>>, vector<8x4x18xf32>
    %73 = vector.shape_cast %72 : vector<8x4x18xf32> to vector<32x18xf32>
    %74 = arith.truncf %73 : vector<32x18xf32> to vector<32x18xbf16>
    %c0_57 = arith.constant 0 : index
    %c0_58 = arith.constant 0 : index
    %c0_59 = arith.constant 0 : index
    %75 = vector.load %arg2[%c0_57, %c0_58, %c0_59] : memref<3x18x256xbf16, #tpu.memory_space<vmem>>, vector<1x18x256xbf16>
    %76 = vector.shape_cast %75 : vector<1x18x256xbf16> to vector<18x256xbf16>
    %cst_60 = arith.constant dense<0.000000e+00> : vector<32x256xf32>
    %77 = tpu.matmul %74, %76, %cst_60 {dimension_numbers = #tpu.dot_dimension_numbers<[1], [0], [0], [1], [0, 0, 1, 1], [], []>} : vector<32x18xbf16>, vector<18x256xbf16>, vector<32x256xf32> -> vector<32x256xf32>
    %78 = arith.addf %71, %77 : vector<32x256xf32>
    %c0_61 = arith.constant 0 : index
    %c15_62 = arith.constant 15 : index
    %c0_63 = arith.constant 0 : index
    %79 = vector.load %arg1[%c0_61, %c15_62, %c0_63] : memref<8x20x18xf32, #tpu.memory_space<vmem>>, vector<8x4x18xf32>
    %80 = vector.shape_cast %79 : vector<8x4x18xf32> to vector<32x18xf32>
    %81 = arith.truncf %80 : vector<32x18xf32> to vector<32x18xbf16>
    %c1_64 = arith.constant 1 : index
    %c0_65 = arith.constant 0 : index
    %c0_66 = arith.constant 0 : index
    %82 = vector.load %arg2[%c1_64, %c0_65, %c0_66] : memref<3x18x256xbf16, #tpu.memory_space<vmem>>, vector<1x18x256xbf16>
    %83 = vector.shape_cast %82 : vector<1x18x256xbf16> to vector<18x256xbf16>
    %cst_67 = arith.constant dense<0.000000e+00> : vector<32x256xf32>
    %84 = tpu.matmul %81, %83, %cst_67 {dimension_numbers = #tpu.dot_dimension_numbers<[1], [0], [0], [1], [0, 0, 1, 1], [], []>} : vector<32x18xbf16>, vector<18x256xbf16>, vector<32x256xf32> -> vector<32x256xf32>
    %85 = arith.addf %78, %84 : vector<32x256xf32>
    %c0_68 = arith.constant 0 : index
    %c1_69 = arith.constant 1 : index
    %c0_70 = arith.constant 0 : index
    %86 = vector.load %arg1[%c0_68, %c1_69, %c0_70] : memref<8x20x18xf32, #tpu.memory_space<vmem>>, vector<8x4x18xf32>
    %87 = vector.shape_cast %86 : vector<8x4x18xf32> to vector<32x18xf32>
    %88 = arith.truncf %87 : vector<32x18xf32> to vector<32x18xbf16>
    %c2_71 = arith.constant 2 : index
    %c0_72 = arith.constant 0 : index
    %c0_73 = arith.constant 0 : index
    %89 = vector.load %arg2[%c2_71, %c0_72, %c0_73] : memref<3x18x256xbf16, #tpu.memory_space<vmem>>, vector<1x18x256xbf16>
    %90 = vector.shape_cast %89 : vector<1x18x256xbf16> to vector<18x256xbf16>
    %cst_74 = arith.constant dense<0.000000e+00> : vector<32x256xf32>
    %91 = tpu.matmul %88, %90, %cst_74 {dimension_numbers = #tpu.dot_dimension_numbers<[1], [0], [0], [1], [0, 0, 1, 1], [], []>} : vector<32x18xbf16>, vector<18x256xbf16>, vector<32x256xf32> -> vector<32x256xf32>
    %92 = arith.addf %85, %91 : vector<32x256xf32>
    %c0_75 = arith.constant 0 : index
    %c0_76 = arith.constant 0 : index
    %93 = vector.load %arg3[%c0_75, %c0_76] : memref<1x256xf32, #tpu.memory_space<vmem>>, vector<1x256xf32>
    %94 = vector.broadcast %93 : vector<1x256xf32> to vector<32x256xf32>
    %95 = arith.mulf %92, %94 : vector<32x256xf32>
    %c0_77 = arith.constant 0 : index
    %c0_78 = arith.constant 0 : index
    %96 = vector.load %arg4[%c0_77, %c0_78] : memref<1x256xf32, #tpu.memory_space<vmem>>, vector<1x256xf32>
    %97 = vector.broadcast %96 : vector<1x256xf32> to vector<32x256xf32>
    %98 = arith.addf %95, %97 : vector<32x256xf32>
    %cst_79 = arith.constant 0.000000e+00 : f32
    %99 = vector.broadcast %cst_79 : f32 to vector<32x256xf32>
    %100 = arith.maximumf %98, %99 : vector<32x256xf32>
    %101 = vector.extract_strided_slice %100 {offsets = [0, 0], sizes = [32, 128], strides = [1, 1]} : vector<32x256xf32> to vector<32x128xf32>
    %102 = vector.extract_strided_slice %100 {offsets = [0, 128], sizes = [32, 128], strides = [1, 1]} : vector<32x256xf32> to vector<32x128xf32>
    %103 = arith.maximumf %101, %102 : vector<32x128xf32>
    %cst_80 = arith.constant 0.000000e+00 : f32
    %104 = vector.broadcast %cst_80 : f32 to vector<32x256xf32>
    %c0_81 = arith.constant 0 : index
    %c15_82 = arith.constant 15 : index
    %c0_83 = arith.constant 0 : index
    %105 = vector.load %arg1[%c0_81, %c15_82, %c0_83] : memref<8x20x18xf32, #tpu.memory_space<vmem>>, vector<8x4x18xf32>
    %106 = vector.shape_cast %105 : vector<8x4x18xf32> to vector<32x18xf32>
    %107 = arith.truncf %106 : vector<32x18xf32> to vector<32x18xbf16>
    %c0_84 = arith.constant 0 : index
    %c0_85 = arith.constant 0 : index
    %c0_86 = arith.constant 0 : index
    %108 = vector.load %arg2[%c0_84, %c0_85, %c0_86] : memref<3x18x256xbf16, #tpu.memory_space<vmem>>, vector<1x18x256xbf16>
    %109 = vector.shape_cast %108 : vector<1x18x256xbf16> to vector<18x256xbf16>
    %cst_87 = arith.constant dense<0.000000e+00> : vector<32x256xf32>
    %110 = tpu.matmul %107, %109, %cst_87 {dimension_numbers = #tpu.dot_dimension_numbers<[1], [0], [0], [1], [0, 0, 1, 1], [], []>} : vector<32x18xbf16>, vector<18x256xbf16>, vector<32x256xf32> -> vector<32x256xf32>
    %111 = arith.addf %104, %110 : vector<32x256xf32>
    %c0_88 = arith.constant 0 : index
    %c1_89 = arith.constant 1 : index
    %c0_90 = arith.constant 0 : index
    %112 = vector.load %arg1[%c0_88, %c1_89, %c0_90] : memref<8x20x18xf32, #tpu.memory_space<vmem>>, vector<8x4x18xf32>
    %113 = vector.shape_cast %112 : vector<8x4x18xf32> to vector<32x18xf32>
    %114 = arith.truncf %113 : vector<32x18xf32> to vector<32x18xbf16>
    %c1_91 = arith.constant 1 : index
    %c0_92 = arith.constant 0 : index
    %c0_93 = arith.constant 0 : index
    %115 = vector.load %arg2[%c1_91, %c0_92, %c0_93] : memref<3x18x256xbf16, #tpu.memory_space<vmem>>, vector<1x18x256xbf16>
    %116 = vector.shape_cast %115 : vector<1x18x256xbf16> to vector<18x256xbf16>
    %cst_94 = arith.constant dense<0.000000e+00> : vector<32x256xf32>
    %117 = tpu.matmul %114, %116, %cst_94 {dimension_numbers = #tpu.dot_dimension_numbers<[1], [0], [0], [1], [0, 0, 1, 1], [], []>} : vector<32x18xbf16>, vector<18x256xbf16>, vector<32x256xf32> -> vector<32x256xf32>
    %118 = arith.addf %111, %117 : vector<32x256xf32>
    %c0_95 = arith.constant 0 : index
    %c6 = arith.constant 6 : index
    %c0_96 = arith.constant 0 : index
    %119 = vector.load %arg1[%c0_95, %c6, %c0_96] : memref<8x20x18xf32, #tpu.memory_space<vmem>>, vector<8x4x18xf32>
    %120 = vector.shape_cast %119 : vector<8x4x18xf32> to vector<32x18xf32>
    %121 = arith.truncf %120 : vector<32x18xf32> to vector<32x18xbf16>
    %c2_97 = arith.constant 2 : index
    %c0_98 = arith.constant 0 : index
    %c0_99 = arith.constant 0 : index
    %122 = vector.load %arg2[%c2_97, %c0_98, %c0_99] : memref<3x18x256xbf16, #tpu.memory_space<vmem>>, vector<1x18x256xbf16>
    %123 = vector.shape_cast %122 : vector<1x18x256xbf16> to vector<18x256xbf16>
    %cst_100 = arith.constant dense<0.000000e+00> : vector<32x256xf32>
    %124 = tpu.matmul %121, %123, %cst_100 {dimension_numbers = #tpu.dot_dimension_numbers<[1], [0], [0], [1], [0, 0, 1, 1], [], []>} : vector<32x18xbf16>, vector<18x256xbf16>, vector<32x256xf32> -> vector<32x256xf32>
    %125 = arith.addf %118, %124 : vector<32x256xf32>
    %c0_101 = arith.constant 0 : index
    %c0_102 = arith.constant 0 : index
    %126 = vector.load %arg3[%c0_101, %c0_102] : memref<1x256xf32, #tpu.memory_space<vmem>>, vector<1x256xf32>
    %127 = vector.broadcast %126 : vector<1x256xf32> to vector<32x256xf32>
    %128 = arith.mulf %125, %127 : vector<32x256xf32>
    %c0_103 = arith.constant 0 : index
    %c0_104 = arith.constant 0 : index
    %129 = vector.load %arg4[%c0_103, %c0_104] : memref<1x256xf32, #tpu.memory_space<vmem>>, vector<1x256xf32>
    %130 = vector.broadcast %129 : vector<1x256xf32> to vector<32x256xf32>
    %131 = arith.addf %128, %130 : vector<32x256xf32>
    %cst_105 = arith.constant 0.000000e+00 : f32
    %132 = vector.broadcast %cst_105 : f32 to vector<32x256xf32>
    %133 = arith.maximumf %131, %132 : vector<32x256xf32>
    %134 = vector.extract_strided_slice %133 {offsets = [0, 0], sizes = [32, 128], strides = [1, 1]} : vector<32x256xf32> to vector<32x128xf32>
    %135 = vector.extract_strided_slice %133 {offsets = [0, 128], sizes = [32, 128], strides = [1, 1]} : vector<32x256xf32> to vector<32x128xf32>
    %136 = arith.maximumf %134, %135 : vector<32x128xf32>
    %137 = arith.maximumf %103, %136 : vector<32x128xf32>
    %138 = vector.shape_cast %137 : vector<32x128xf32> to vector<8x4x128xf32>
    %c0_106 = arith.constant 0 : index
    %c1_107 = arith.constant 1 : index
    %c0_108 = arith.constant 0 : index
    %139 = vector.load %arg14[%c0_106, %c1_107, %c0_108] : memref<8x5x128xf32, #tpu.memory_space<vmem>>, vector<8x4x128xf32>
    tpu.vector_store %arg14[%c0_106, %c1_107, %c0_108], %138 {strides = array<i32>} : memref<8x5x128xf32, #tpu.memory_space<vmem>>, vector<8x4x128xf32>,
    %c0_109 = arith.constant 0 : index
    %c0_110 = arith.constant 0 : index
    %c0_111 = arith.constant 0 : index
    %140 = vector.load %arg14[%c0_109, %c0_110, %c0_111] : memref<8x5x128xf32, #tpu.memory_space<vmem>>, vector<8x1x128xf32>
    tpu.vector_store %arg14[%c0_109, %c0_110, %c0_111], %0 {strides = array<i32>} : memref<8x5x128xf32, #tpu.memory_space<vmem>>, vector<8x1x128xf32>,
    %c0_112 = arith.constant 0 : index
    %c0_113 = arith.constant 0 : index
    %c0_114 = arith.constant 0 : index
    %141 = vector.load %arg14[%c0_112, %c0_113, %c0_114] : memref<8x5x128xf32, #tpu.memory_space<vmem>>, vector<8x4x128xf32>
    %142 = vector.shape_cast %141 : vector<8x4x128xf32> to vector<32x128xf32>
    %c0_115 = arith.constant 0 : index
    %c0_116 = arith.constant 0 : index
    %c0_117 = arith.constant 0 : index
    %143 = vector.load %arg13[%c0_115, %c0_116, %c0_117] : memref<8x5x128xf32, #tpu.memory_space<vmem>>, vector<8x4x128xf32>
    %144 = vector.shape_cast %143 : vector<8x4x128xf32> to vector<32x128xf32>
    %c0_118 = arith.constant 0 : index
    %c1_119 = arith.constant 1 : index
    %c0_120 = arith.constant 0 : index
    %145 = vector.load %arg14[%c0_118, %c1_119, %c0_120] : memref<8x5x128xf32, #tpu.memory_space<vmem>>, vector<8x4x128xf32>
    %146 = vector.shape_cast %145 : vector<8x4x128xf32> to vector<32x128xf32>
    %147 = tpu.concatenate %142, %144, %146 in 1 : vector<32x128xf32>, vector<32x128xf32>, vector<32x128xf32> -> vector<32x384xf32>
    %148 = arith.truncf %147 : vector<32x384xf32> to vector<32x384xbf16>
    %c0_121 = arith.constant 0 : index
    %c0_122 = arith.constant 0 : index
    %149 = vector.load %arg5[%c0_121, %c0_122] : memref<384x256xbf16, #tpu.memory_space<vmem>>, vector<384x256xbf16>
    %cst_123 = arith.constant dense<0.000000e+00> : vector<32x256xf32>
    %150 = tpu.matmul %148, %149, %cst_123 {dimension_numbers = #tpu.dot_dimension_numbers<[1], [0], [0], [1], [0, 0, 1, 1], [], []>} : vector<32x384xbf16>, vector<384x256xbf16>, vector<32x256xf32> -> vector<32x256xf32>
    %c0_124 = arith.constant 0 : index
    %c0_125 = arith.constant 0 : index
    %151 = vector.load %arg6[%c0_124, %c0_125] : memref<1x256xf32, #tpu.memory_space<vmem>>, vector<1x256xf32>
    %152 = vector.broadcast %151 : vector<1x256xf32> to vector<32x256xf32>
    %153 = arith.mulf %150, %152 : vector<32x256xf32>
    %c0_126 = arith.constant 0 : index
    %c0_127 = arith.constant 0 : index
    %154 = vector.load %arg7[%c0_126, %c0_127] : memref<1x256xf32, #tpu.memory_space<vmem>>, vector<1x256xf32>
    %155 = vector.broadcast %154 : vector<1x256xf32> to vector<32x256xf32>
    %156 = arith.addf %153, %155 : vector<32x256xf32>
    %cst_128 = arith.constant 0.000000e+00 : f32
    %157 = vector.broadcast %cst_128 : f32 to vector<32x256xf32>
    %158 = arith.maximumf %156, %157 : vector<32x256xf32>
    %159 = vector.extract_strided_slice %158 {offsets = [0, 0], sizes = [32, 128], strides = [1, 1]} : vector<32x256xf32> to vector<32x128xf32>
    %160 = vector.extract_strided_slice %158 {offsets = [0, 128], sizes = [32, 128], strides = [1, 1]} : vector<32x256xf32> to vector<32x128xf32>
    %161 = arith.maximumf %159, %160 : vector<32x128xf32>
    %c0_129 = arith.constant 0 : index
    %c0_130 = arith.constant 0 : index
    %c0_131 = arith.constant 0 : index
    %162 = vector.load %arg13[%c0_129, %c0_130, %c0_131] : memref<8x5x128xf32, #tpu.memory_space<vmem>>, vector<8x4x128xf32>
    %163 = vector.shape_cast %162 : vector<8x4x128xf32> to vector<32x128xf32>
    %c0_132 = arith.constant 0 : index
    %c1_133 = arith.constant 1 : index
    %c0_134 = arith.constant 0 : index
    %164 = vector.load %arg14[%c0_132, %c1_133, %c0_134] : memref<8x5x128xf32, #tpu.memory_space<vmem>>, vector<8x4x128xf32>
    %165 = vector.shape_cast %164 : vector<8x4x128xf32> to vector<32x128xf32>
    %c0_135 = arith.constant 0 : index
    %c1_136 = arith.constant 1 : index
    %c0_137 = arith.constant 0 : index
    %166 = vector.load %arg13[%c0_135, %c1_136, %c0_137] : memref<8x5x128xf32, #tpu.memory_space<vmem>>, vector<8x4x128xf32>
    %167 = vector.shape_cast %166 : vector<8x4x128xf32> to vector<32x128xf32>
    %168 = tpu.concatenate %163, %165, %167 in 1 : vector<32x128xf32>, vector<32x128xf32>, vector<32x128xf32> -> vector<32x384xf32>
    %169 = arith.truncf %168 : vector<32x384xf32> to vector<32x384xbf16>
    %c0_138 = arith.constant 0 : index
    %c0_139 = arith.constant 0 : index
    %170 = vector.load %arg5[%c0_138, %c0_139] : memref<384x256xbf16, #tpu.memory_space<vmem>>, vector<384x256xbf16>
    %cst_140 = arith.constant dense<0.000000e+00> : vector<32x256xf32>
    %171 = tpu.matmul %169, %170, %cst_140 {dimension_numbers = #tpu.dot_dimension_numbers<[1], [0], [0], [1], [0, 0, 1, 1], [], []>} : vector<32x384xbf16>, vector<384x256xbf16>, vector<32x256xf32> -> vector<32x256xf32>
    %c0_141 = arith.constant 0 : index
    %c0_142 = arith.constant 0 : index
    %172 = vector.load %arg6[%c0_141, %c0_142] : memref<1x256xf32, #tpu.memory_space<vmem>>, vector<1x256xf32>
    %173 = vector.broadcast %172 : vector<1x256xf32> to vector<32x256xf32>
    %174 = arith.mulf %171, %173 : vector<32x256xf32>
    %c0_143 = arith.constant 0 : index
    %c0_144 = arith.constant 0 : index
    %175 = vector.load %arg7[%c0_143, %c0_144] : memref<1x256xf32, #tpu.memory_space<vmem>>, vector<1x256xf32>
    %176 = vector.broadcast %175 : vector<1x256xf32> to vector<32x256xf32>
    %177 = arith.addf %174, %176 : vector<32x256xf32>
    %cst_145 = arith.constant 0.000000e+00 : f32
    %178 = vector.broadcast %cst_145 : f32 to vector<32x256xf32>
    %179 = arith.maximumf %177, %178 : vector<32x256xf32>
    %180 = vector.extract_strided_slice %179 {offsets = [0, 0], sizes = [32, 128], strides = [1, 1]} : vector<32x256xf32> to vector<32x128xf32>
    %181 = vector.extract_strided_slice %179 {offsets = [0, 128], sizes = [32, 128], strides = [1, 1]} : vector<32x256xf32> to vector<32x128xf32>
    %182 = arith.maximumf %180, %181 : vector<32x128xf32>
    %183 = arith.maximumf %161, %182 : vector<32x128xf32>
    %184 = vector.shape_cast %183 : vector<32x128xf32> to vector<8x4x128xf32>
    %185 = vector.extract_strided_slice %184 {offsets = [0, 0, 0], sizes = [8, 1, 128], strides = [1, 1, 1]} : vector<8x4x128xf32> to vector<8x1x128xf32>
    %186 = vector.shape_cast %185 : vector<8x1x128xf32> to vector<8x128xf32>
    %187 = vector.extract_strided_slice %184 {offsets = [0, 1, 0], sizes = [8, 1, 128], strides = [1, 1, 1]} : vector<8x4x128xf32> to vector<8x1x128xf32>
    %188 = vector.shape_cast %187 : vector<8x1x128xf32> to vector<8x128xf32>
    %189 = vector.extract_strided_slice %184 {offsets = [0, 2, 0], sizes = [8, 1, 128], strides = [1, 1, 1]} : vector<8x4x128xf32> to vector<8x1x128xf32>
    %190 = vector.shape_cast %189 : vector<8x1x128xf32> to vector<8x128xf32>
    %191 = vector.extract_strided_slice %184 {offsets = [0, 3, 0], sizes = [8, 1, 128], strides = [1, 1, 1]} : vector<8x4x128xf32> to vector<8x1x128xf32>
    %192 = vector.shape_cast %191 : vector<8x1x128xf32> to vector<8x128xf32>
    %193 = tpu.concatenate %186, %188, %190, %192 in 1 : vector<8x128xf32>, vector<8x128xf32>, vector<8x128xf32>, vector<8x128xf32> -> vector<8x512xf32>
    %194 = arith.truncf %193 : vector<8x512xf32> to vector<8x512xbf16>
    %c0_146 = arith.constant 0 : index
    %c0_147 = arith.constant 0 : index
    %195 = vector.load %arg8[%c0_146, %c0_147] : memref<512x64xbf16, #tpu.memory_space<vmem>>, vector<512x64xbf16>
    %cst_148 = arith.constant dense<0.000000e+00> : vector<8x64xf32>
    %196 = tpu.matmul %194, %195, %cst_148 {dimension_numbers = #tpu.dot_dimension_numbers<[1], [0], [0], [1], [0, 0, 1, 1], [], []>} : vector<8x512xbf16>, vector<512x64xbf16>, vector<8x64xf32> -> vector<8x64xf32>
    %c0_149 = arith.constant 0 : index
    %c0_150 = arith.constant 0 : index
    %197 = vector.load %arg9[%c0_149, %c0_150] : memref<1x64xf32, #tpu.memory_space<vmem>>, vector<1x64xf32>
    %198 = vector.broadcast %197 : vector<1x64xf32> to vector<8x64xf32>
    %199 = arith.addf %196, %198 : vector<8x64xf32>
    %cst_151 = arith.constant 0.000000e+00 : f32
    %200 = vector.broadcast %cst_151 : f32 to vector<8x64xf32>
    %201 = arith.maximumf %199, %200 : vector<8x64xf32>
    %202 = arith.truncf %201 : vector<8x64xf32> to vector<8x64xbf16>
    %c0_152 = arith.constant 0 : index
    %c0_153 = arith.constant 0 : index
    %203 = vector.load %arg10[%c0_152, %c0_153] : memref<64x128xbf16, #tpu.memory_space<vmem>>, vector<64x128xbf16>
    %cst_154 = arith.constant dense<0.000000e+00> : vector<8x128xf32>
    %204 = tpu.matmul %202, %203, %cst_154 {dimension_numbers = #tpu.dot_dimension_numbers<[1], [0], [0], [1], [0, 0, 1, 1], [], []>} : vector<8x64xbf16>, vector<64x128xbf16>, vector<8x128xf32> -> vector<8x128xf32>
    %c0_155 = arith.constant 0 : index
    %c0_156 = arith.constant 0 : index
    %205 = vector.load %arg11[%c0_155, %c0_156] : memref<1x128xf32, #tpu.memory_space<vmem>>, vector<1x128xf32>
    %206 = vector.broadcast %205 : vector<1x128xf32> to vector<8x128xf32>
    %207 = arith.addf %204, %206 : vector<8x128xf32>
    %c0_157 = arith.constant 0 : index
    %c0_158 = arith.constant 0 : index
    %208 = vector.load %arg12[%c0_157, %c0_158] : memref<8x128xf32, #tpu.memory_space<vmem>>, vector<8x128xf32>
    tpu.vector_store %arg12[%c0_157, %c0_158], %207 {strides = array<i32>} : memref<8x128xf32, #tpu.memory_space<vmem>>, vector<8x128xf32>,
    return
  }
  func.func @transform_0(%arg0: i32) -> (i32, i32, i32) {
    %c0_i32 = arith.constant 0 : i32
    %c0_i32_0 = arith.constant 0 : i32
    %c0_i32_1 = arith.constant 0 : i32
    return %arg0, %c0_i32, %c0_i32_0 : i32, i32, i32
  }
  func.func @transform_1(%arg0: i32) -> (i32, i32, i32) {
    %c0_i32 = arith.constant 0 : i32
    %c0_i32_0 = arith.constant 0 : i32
    %c0_i32_1 = arith.constant 0 : i32
    %c0_i32_2 = arith.constant 0 : i32
    return %c0_i32, %c0_i32_0, %c0_i32_1 : i32, i32, i32
  }
  func.func @transform_2(%arg0: i32) -> (i32, i32) {
    %c0_i32 = arith.constant 0 : i32
    %c0_i32_0 = arith.constant 0 : i32
    %c0_i32_1 = arith.constant 0 : i32
    return %c0_i32, %c0_i32_0 : i32, i32
  }
  func.func @transform_3(%arg0: i32) -> (i32, i32) {
    %c0_i32 = arith.constant 0 : i32
    %c0_i32_0 = arith.constant 0 : i32
    %c0_i32_1 = arith.constant 0 : i32
    return %c0_i32, %c0_i32_0 : i32, i32
  }
  func.func @transform_4(%arg0: i32) -> (i32, i32) {
    %c0_i32 = arith.constant 0 : i32
    %c0_i32_0 = arith.constant 0 : i32
    %c0_i32_1 = arith.constant 0 : i32
    return %c0_i32, %c0_i32_0 : i32, i32
  }
  func.func @transform_5(%arg0: i32) -> (i32, i32) {
    %c0_i32 = arith.constant 0 : i32
    %c0_i32_0 = arith.constant 0 : i32
    %c0_i32_1 = arith.constant 0 : i32
    return %c0_i32, %c0_i32_0 : i32, i32
  }
  func.func @transform_6(%arg0: i32) -> (i32, i32) {
    %c0_i32 = arith.constant 0 : i32
    %c0_i32_0 = arith.constant 0 : i32
    %c0_i32_1 = arith.constant 0 : i32
    return %c0_i32, %c0_i32_0 : i32, i32
  }
  func.func @transform_7(%arg0: i32) -> (i32, i32) {
    %c0_i32 = arith.constant 0 : i32
    %c0_i32_0 = arith.constant 0 : i32
    %c0_i32_1 = arith.constant 0 : i32
    return %c0_i32, %c0_i32_0 : i32, i32
  }
  func.func @transform_8(%arg0: i32) -> (i32, i32) {
    %c0_i32 = arith.constant 0 : i32
    %c0_i32_0 = arith.constant 0 : i32
    %c0_i32_1 = arith.constant 0 : i32
    return %c0_i32, %c0_i32_0 : i32, i32
  }
  func.func @transform_9(%arg0: i32) -> (i32, i32) {
    %c0_i32 = arith.constant 0 : i32
    %c0_i32_0 = arith.constant 0 : i32
    %c0_i32_1 = arith.constant 0 : i32
    return %c0_i32, %c0_i32_0 : i32, i32
  }
  func.func @transform_10(%arg0: i32) -> (i32, i32) {
    %c0_i32 = arith.constant 0 : i32
    %c0_i32_0 = arith.constant 0 : i32
    %c0_i32_1 = arith.constant 0 : i32
    return %c0_i32, %c0_i32_0 : i32, i32
  }
  func.func @transform_11(%arg0: i32) -> (i32, i32) {
    %c0_i32 = arith.constant 0 : i32
    %c0_i32_0 = arith.constant 0 : i32
    return %arg0, %c0_i32 : i32, i32
  }
}

</mosaic_0001>

<bundles_post_ra>
// kernel: simple_cnn_forward.1
= control target key start
LH: loop header
LB: loop body
LE: loop exit
PB: predicated region body
PF: predicated region fallthrough
CT: control target
= control target key end

     0   :  { %vm120_vm0 = vcmask 1040384   ;;  %v3119_v1 = vmov 0   ;;  %vm113_vm1 = vcmask 146432   ;;  %vm2063_vm2 = vcmask 1041409   ;;  %s3972_s1 = inlined_call_operand.vmem [shape: bf16[3,18,256], index: 1, kind: input, shape index: {}]   ;;  %s3973_s0 = inlined_call_operand.vmem [shape: f32[8,20,18], index: 0, kind: input, shape index: {}]   ;;  %s3974_s4 = inlined_call_operand.vmem [shape: bf16[384,256], index: 4, kind: input, shape index: {}]   ;;  %s3975_s2 = inlined_call_operand.vmem [shape: f32[1,256], index: 2, kind: input, shape index: {}]   ;;  %s3976_s3 = inlined_call_operand.vmem [shape: f32[1,256], index: 3, kind: input, shape index: {}]   ;;  %s3977_s7 = inlined_call_operand.vmem [shape: bf16[512,64], index: 7, kind: input, shape index: {}]   ;;  %s3978_s9 = inlined_call_operand.vmem [shape: bf16[64,128], index: 9, kind: input, shape index: {}]   ;;  %s3979_s5 = inlined_call_operand.vmem [shape: f32[1,256], index: 5, kind: input, shape index: {}]   ;;  %s3980_s6 = inlined_call_operand.vmem [shape: f32[1,256], index: 6, kind: input, shape index: {}]   ;;  %s3981_s8 = inlined_call_operand.vmem [shape: f32[1,64], index: 8, kind: input, shape index: {}]   ;;  %s3982_s10 = inlined_call_operand.vmem [shape: f32[1,128], index: 10, kind: input, shape index: {}]   ;;  %s3983_s11 = inlined_call_operand.vmem [shape: f32[8,128], index: 11, kind: output, shape index: {}]  }
   0x1   :  { %v3185_v0 = vld [vmem:[%s3972_s1 + $0x1c] ss:$8 sps:$4 sm:$0xff]   ;;  %159 = vmatprep.mubr.bf16.mxu0 %v3119_v1  ;;  %169 = vmatprep.mubr.bf16.mxu1 %v3119_v1  ;;  %v3192_v2 = vld [vmem:[%s3972_s1 + $0x18] ss:$8 sps:$4 sm:$0xff]   ;;  %v2637_v3 = vld [vmem:[%s3972_s1 + $0x28] sm:$0x11] }
   0x2   :  { %127 = vmatprep.subr.bf16.mxu0 %v3185_v0  ;;  %2855 = vmatprep.subr.bf16.mxu1 %v3185_v0  ;;  %v2641_v4 = vcombine.high %v2637_v3, %v2637_v3  ;;  %v2640_v5 = vcombine.low %v2637_v3, %v2637_v3  ;;  %v2947_v6 = vld [vmem:[%s3973_s0 + $0x5] ss:$24 sps:$4 sm:$0xff]   ;;  %v2948_v7 = vld [vmem:[%s3973_s0 + $0x35] ss:$24 sps:$4 sm:$0xff]   ;;  %v2980_v57 = vld [vmem:[%s3973_s0 + $0x1] ss:$24 sps:$4 sm:$0xff]  }
   0x3   :  { %128 = vmatpush1.bf16.msra.mxu0 %v3192_v2  ;;  %2857 = vmatpush1.bf16.msra.mxu1 %v3192_v2  ;;  %v2949_v9 = vld [vmem:[%s3973_s0 + $0x65] ss:$24 sps:$4 sm:$0xff]   ;;  %v2950_v10 = vld [vmem:[%s3973_s0 + $0x95] ss:$24 sps:$4 sm:$0xff]   ;;  %v92_v11 = vpack.c.bf16 %v2948_v7, %v2947_v6  ;;  %v2981_v58 = vld [vmem:[%s3973_s0 + $0x31] ss:$24 sps:$4 sm:$0xff]  }
   0x4   :  { %2642 = vmatprep.subr.msk.bf16.mxu0 %vm120_vm0, %v2641_v4  ;;  %2856 = vmatprep.subr.msk.bf16.mxu1 %vm120_vm0, %v2641_v4  ;;  %v122_v8 = vsel %vm120_vm0, %v2640_v5, 0  ;;  %v3219_v12 = vld [vmem:[%s3972_s1] ss:$8 sps:$4 sm:$0xff]   ;;  %v3224_v13 = vld [vmem:[%s3972_s1 + $0x4] ss:$8 sps:$4 sm:$0xff]   ;;  %v3226_v14 = vpack.c.bf16 %v2950_v10, %v2949_v9  ;;  %v931_v59 = vpack.c.bf16 %v2981_v58, %v2980_v57  ;;  %vm2065_vm3 = vcmask 1042434  }
   0x5   :  { %v67_v15 = vld [vmem:[%s3972_s1 + $0x10] sm:$0x11]  ;;  %v2955_v16 = vld [vmem:[%s3973_s0 + $0xa] ss:$24 sps:$4 sm:$0xff]   ;;  %v2991_v10 = vld [vmem:[%s3973_s0 + $0x6] ss:$24 sps:$4 sm:$0xff]  }
   0x6   :  { %v2647_v17 = vcombine.low %v67_v15, %v67_v15  ;;  %v2648_v18 = vcombine.high %v67_v15, %v67_v15  ;;  %v2956_v19 = vld [vmem:[%s3973_s0 + $0x3a] ss:$24 sps:$4 sm:$0xff]   ;;  %v2960_v24 = vld [vmem:[%s3973_s0 + $0x6a] ss:$24 sps:$4 sm:$0xff]   ;;  %v378_v57 = vld [vmem:[%s3975_s2] sm:$0x3] }
   0x7   :  { %130 = vmatpush1.bf16.msra.mxu0 %v122_v8  ;;  %2858 = vmatpush1.bf16.msra.mxu1 %v122_v8  ;;  %v2958_v21 = vld [vmem:[%s3973_s0] ss:$24 sps:$4 sm:$0xff]   ;;  %v2959_v22 = vld [vmem:[%s3973_s0 + $0x30] ss:$24 sps:$4 sm:$0xff]   ;;  %v284_v23 = vpack.c.bf16 %v2956_v19, %v2955_v16  ;;  %v3262_v25 = vld [vmem:[%s3972_s1 + $0x34] ss:$8 sps:$4 sm:$0xff]  }
   0x8   :  { %430 = vmatprep.subr.bf16.mxu1 %v3185_v0  ;;  %207 = vmatprep.subr.bf16.mxu0 %v3224_v13  ;;  %v202_v20 = vsel %vm120_vm0, %v2647_v17, 0  ;;  %v63_v26 = vpack.c.bf16 %v2959_v22, %v2958_v21  ;;  %v2961_v27 = vld [vmem:[%s3973_s0 + $0x9a] ss:$24 sps:$4 sm:$0xff]   ;;  %v2654_v28 = vld [vmem:[%s3972_s1 + $0x40] sm:$0x11]  ;;  %v3120_v19 = vmov 0.0  }
   0x9   :  { %v3277_v29 = vld [vmem:[%s3972_s1 + $0x30] ss:$8 sps:$4 sm:$0xff]   ;;  %v2658_v31 = vcombine.high %v2654_v28, %v2654_v28  ;;  %v2657_v32 = vcombine.low %v2654_v28, %v2654_v28  ;;  %v285_v33 = vpack.c.bf16 %v2961_v27, %v2960_v24  ;;  %v2673_v37 = vld [vmem:[%s3972_s1 + $0x28] sm:$0x11]  ;;  %1327 = vst [vmem:[#allocation3] sm:$0x1] %v3120_v19 }
   0xa   :  { %2643 = vmatmul.mubr.msk.bf16.vlgmr.msra.gmra.mrb[0].mxu0 %vm113_vm1, %v92_v11  ;;  %2644 = vmatmul.mubr.msk.bf16.vlgmr.msra.gmra.mrb[0].mxu1 %vm113_vm1, %v3226_v14  ;;  %v2962_v30 = vld [vmem:[%s3973_s0 + $0x60] ss:$24 sps:$4 sm:$0xff]   ;;  %v2963_v34 = vld [vmem:[%s3973_s0 + $0x90] ss:$24 sps:$4 sm:$0xff]   ;;  %v2677_v38 = vcombine.high %v2673_v37, %v2673_v37  ;;  %v2676_v39 = vcombine.low %v2673_v37, %v2673_v37  ;;  %v2997_v16 = vld [vmem:[%s3974_s4 + $0x4] ss:$8 sps:$4 sm:$0xff]  }
   0xb   :  { %431 = vmatpush1.bf16.msra.mxu1 %v3192_v2  ;;  %208 = vmatpush1.bf16.msra.mxu0 %v3219_v12  ;;  %v312_v35 = vsel %vm120_vm0, %v2657_v32, 0  ;;  %v64_v36 = vpack.c.bf16 %v2963_v34, %v2962_v30  ;;  %v2969_v41 = vld [vmem:[%s3973_s0 + $0xf] ss:$24 sps:$4 sm:$0xff]   ;;  %v2970_v42 = vld [vmem:[%s3973_s0 + $0x3f] ss:$24 sps:$4 sm:$0xff]   ;;  %vm2067_vm4 = vcmask 1043459  }
   0xc   :  { %2662 = vmatprep.subr.msk.bf16.mxu1 %vm120_vm0, %v2641_v4  ;;  %462 = vmatprep.mubr.bf16.mxu1 %v3119_v1  ;;  %v769_v40 = vsel %vm120_vm0, %v2676_v39, 0  ;;  %v560_v43 = vpack.c.bf16 %v2970_v42, %v2969_v41  ;;  %v2973_v44 = vld [vmem:[%s3973_s0 + $0xf] ss:$24 sps:$4 sm:$0xff]   ;;  %v2974_v45 = vld [vmem:[%s3973_s0 + $0x3f] ss:$24 sps:$4 sm:$0xff]   ;;  %vm2069_vm5 = vcmask 1044484  }
   0xd   :  { %2649 = vmatprep.subr.msk.bf16.mxu0 %vm120_vm0, %v2648_v18  ;;  %239 = vmatprep.mubr.bf16.mxu0 %v3119_v1  ;;  %v742_v46 = vpack.c.bf16 %v2974_v45, %v2973_v44  ;;  %v2975_v47 = vld [vmem:[%s3973_s0 + $0x6f] ss:$24 sps:$4 sm:$0xff]   ;;  %v2976_v48 = vld [vmem:[%s3973_s0 + $0x9f] ss:$24 sps:$4 sm:$0xff]   ;;  %1328 = vst [vmem:[#allocation3 + $0x8] sm:$0x1] %v3120_v19 }
   0xe   :  { %v717_v49 = vld [vmem:[%s3972_s1 + $0x10] sm:$0x11]  ;;  %v561_v52 = vpack.c.bf16 %v2976_v48, %v2975_v47  ;;  %v2978_v54 = vld [vmem:[%s3973_s0 + $0x9f] ss:$24 sps:$4 sm:$0xff]   ;;  %1329 = vst [vmem:[#allocation3 + $0x10] sm:$0x1] %v3120_v19 }
   0xf   :  { %433 = vmatpush1.bf16.msra.mxu1 %v122_v8  ;;  %210 = vmatpush1.bf16.msra.mxu0 %v202_v20  ;;  %v2684_v50 = vcombine.high %v717_v49, %v717_v49  ;;  %v2683_v51 = vcombine.low %v717_v49, %v717_v49  ;;  %v2977_v53 = vld [vmem:[%s3973_s0 + $0x6f] ss:$24 sps:$4 sm:$0xff]   ;;  %v2985_v63 = vld [vmem:[%s3973_s0 + $0x61] ss:$24 sps:$4 sm:$0xff]   ;;  %1330 = vst [vmem:[#allocation3 + $0x18] sm:$0x1] %v3120_v19 }
  0x10   :  { %483 = vmatprep.subr.bf16.mxu1 %v3224_v13  ;;  %317 = vmatprep.subr.bf16.mxu0 %v3262_v25  ;;  %v743_v56 = vpack.c.bf16 %v2978_v54, %v2977_v53  ;;  %v2983_v60 = vld [vmem:[%s3973_s0 + $0xa] ss:$24 sps:$4 sm:$0xff]   ;;  %v2984_v61 = vld [vmem:[%s3973_s0 + $0x3a] ss:$24 sps:$4 sm:$0xff]   ;;  %681 = vst [vmem:[#allocation2 + $0x4] sm:$0x1] %v3120_v19  ;;  %v380_v54 = vlaneseq }
  0x11   :  { %v849_v55 = vsel %vm120_vm0, %v2683_v51, 0  ;;  %v713_v62 = vpack.c.bf16 %v2984_v61, %v2983_v60  ;;  %v2987_v6 = vld [vmem:[%s3973_s0 + $0x6a] ss:$24 sps:$4 sm:$0xff]   ;;  %v2988_v7 = vld [vmem:[%s3973_s0 + $0x9a] ss:$24 sps:$4 sm:$0xff]   ;;  %vm2071_vm6 = vcmask 1045509  }
  0x12   :  { %2663 = vmatmul.mubr.msk.bf16.vlgmr.msra.gmra.mrb[4].mxu1 %vm113_vm1, %v284_v23  ;;  %v714_v9 = vpack.c.bf16 %v2988_v7, %v2987_v6  ;;  %v2995_v17 = vld [vmem:[%s3974_s4] ss:$8 sps:$4 sm:$0xff]   ;;  %682 = vst [vmem:[#allocation2 + $0xc] sm:$0x1] %v3120_v19  ;;  %683 = vst [vmem:[#allocation2 + $0x14] sm:$0x1] %v3120_v19 }
  0x13   :  { %484 = vmatpush1.bf16.msra.mxu1 %v3219_v12  ;;  %472 = vmatprep.mubr.bf16.mxu1 %v3119_v1  ;;  %684 = vst [vmem:[#allocation2 + $0x1c] sm:$0x1] %v3120_v19  ;;  %685 = vst [vmem:[#allocation2 + $0x24] sm:$0x1] %v3120_v19  ;;  %v3003_v21 = vld [vmem:[%s3974_s4 + $0x24] ss:$8 sps:$4 sm:$0xff]  }
  0x14   :  { %2665 = vmatprep.subr.msk.bf16.mxu1 %vm120_vm0, %v2648_v18  ;;  %v3000_v18 = vld [vmem:[%s3974_s4 + $0x14] ss:$8 sps:$4 sm:$0xff]   ;;  %686 = vst [vmem:[#allocation2 + $0x2c] sm:$0x1] %v3120_v19  ;;  %687 = vst [vmem:[#allocation2 + $0x34] sm:$0x1] %v3120_v19 }
  0x15   :  { %688 = vst [vmem:[#allocation2 + $0x3c] sm:$0x1] %v3120_v19  ;;  %1331 = vst [vmem:[#allocation3 + $0x20] sm:$0x1] %v3120_v19  ;;  %v3001_v22 = vld [vmem:[%s3974_s4 + $0x20] ss:$8 sps:$4 sm:$0xff]  }
  0x16   :  { %2650 = vmatmul.mubr.msk.bf16.vlgmr.msra.gmra.mrb[0].mxu0 %vm113_vm1, %v63_v26  ;;  %1332 = vst [vmem:[#allocation3 + $0x28] sm:$0x1] %v3120_v19  ;;  %1333 = vst [vmem:[#allocation3 + $0x30] sm:$0x1] %v3120_v19  ;;  %v3004_v24 = vld [vmem:[%s3974_s4 + $0x30] ss:$8 sps:$4 sm:$0xff]  }
  0x17   :  { %486 = vmatpush1.bf16.msra.mxu1 %v202_v20  ;;  %249 = vmatprep.mubr.bf16.mxu0 %v3119_v1  ;;  %1334 = vst [vmem:[#allocation3 + $0x38] sm:$0x1] %v3120_v19  ;;  %v2998_v20 = vld [vmem:[%s3974_s4 + $0x10] ss:$8 sps:$4 sm:$0xff]   ;;  %v3009_v26 = vld [vmem:[%s3974_s4 + $0x44] ss:$8 sps:$4 sm:$0xff]  }
  0x18   :  { %318 = vmatpush1.bf16.msra.mxu0 %v3277_v29  ;;  %568 = vmatprep.subr.bf16.mxu1 %v3262_v25  ;;  %v3012_v27 = vld [vmem:[%s3974_s4 + $0x50] ss:$8 sps:$4 sm:$0xff]   ;;  %v3014_v28 = vld [vmem:[%s3974_s4 + $0x54] ss:$8 sps:$4 sm:$0xff]   ;;  %v3015_v30 = vld [vmem:[%s3974_s4 + $0x60] ss:$8 sps:$4 sm:$0xff]  }
  0x19   :  { %2659 = vmatprep.subr.msk.bf16.mxu0 %vm120_vm0, %v2658_v31  ;;  %v3018_v32 = vld [vmem:[%s3974_s4 + $0x70] ss:$8 sps:$4 sm:$0xff]   ;;  %v3021_v34 = vld [vmem:[%s3974_s4 + $0x80] ss:$8 sps:$4 sm:$0xff]   ;;  %v3029_v37 = vld [vmem:[%s3974_s4 + $0xa4] ss:$8 sps:$4 sm:$0xff]  }
  0x1a   :  { %2664 = vmatmul.mubr.msk.bf16.gmra.mrb[8].mxu1 %vm113_vm1, %v285_v33  ;;  %v3032_v39 = vld [vmem:[%s3974_s4 + $0xb4] ss:$8 sps:$4 sm:$0xff]   ;;  %v3035_v41 = vld [vmem:[%s3974_s4 + $0xc4] ss:$8 sps:$4 sm:$0xff]   ;;  %v3033_v42 = vld [vmem:[%s3974_s4 + $0xc0] ss:$8 sps:$4 sm:$0xff]  }
  0x1b   :  { %515 = vmatprep.mubr.bf16.mxu1 %v3119_v1  ;;  %v3036_v44 = vld [vmem:[%s3974_s4 + $0xd0] ss:$8 sps:$4 sm:$0xff]   ;;  %v3041_v45 = vld [vmem:[%s3974_s4 + $0xe4] ss:$8 sps:$4 sm:$0xff]   ;;  %v3044_v47 = vld [vmem:[%s3974_s4 + $0xf4] ss:$8 sps:$4 sm:$0xff]  }
  0x1c   :  { %320 = vmatpush1.bf16.msra.mxu0 %v312_v35  ;;  %v3042_v48 = vld [vmem:[%s3974_s4 + $0xf0] ss:$8 sps:$4 sm:$0xff]   ;;  %v3047_v49 = vld [vmem:[%s3974_s4 + $0x104] ss:$8 sps:$4 sm:$0xff]   ;;  %vm2073_vm7 = vcmask 1046534   ;;  %vm2075_vm8 = vcmask 1047559  }
  0x1d   :  { %774 = vmatprep.subr.bf16.mxu0 %v3185_v0  ;;  %vm3121_vm9 = vmmov 0   ;;  %vm2586_vm10 = vcmask 523264  }
  0x1e   :  { %2651 = vmatmul.mubr.msk.bf16.gmra.mrb[4].mxu0 %vm113_vm1, %v64_v36  ;;  %v3024_v36 = vld [vmem:[%s3974_s4 + $0x90] ss:$8 sps:$4 sm:$0xff]  }
  0x1f   :  { %349 = vmatprep.mubr.bf16.mxu0 %v3119_v1 }
  0x22   :  { %2666 = vmatmul.mubr.msk.bf16.vlgmr.msra.gmra.mrb[4].mxu1 %vm113_vm1, %v92_v11  ;;  %v2992_v11 = vld [vmem:[%s3973_s0 + $0x36] ss:$24 sps:$4 sm:$0xff]  }
  0x23   :  { %569 = vmatpush1.bf16.msra.mxu1 %v3277_v29  ;;  %525 = vmatprep.mubr.bf16.mxu1 %v3119_v1 }
  0x24   :  { %2668 = vmatprep.subr.msk.bf16.mxu1 %vm120_vm0, %v2658_v31  ;;  %v3020_v31 = vld [vmem:[%s3974_s4 + $0x74] ss:$8 sps:$4 sm:$0xff]  }
  0x26   :  { %2660 = vmatmul.mubr.msk.bf16.vlgmr.msra.gmra.mrb[0].mxu0 %vm113_vm1, %v284_v23  ;;  %v3006_v23 = vld [vmem:[%s3974_s4 + $0x34] ss:$8 sps:$4 sm:$0xff]  }
  0x27   :  { %571 = vmatpush1.bf16.msra.mxu1 %v312_v35  ;;  %359 = vmatprep.mubr.bf16.mxu0 %v3119_v1  ;;  %v3026_v35 = vld [vmem:[%s3974_s4 + $0x94] ss:$8 sps:$4 sm:$0xff]  }
  0x28   :  { %775 = vmatpush1.bf16.msra.mxu0 %v3192_v2  ;;  %1076 = vmatprep.subr.bf16.mxu1 %v3185_v0  ;;  %v2986_v0 = vld [vmem:[%s3973_s0 + $0x91] ss:$24 sps:$4 sm:$0xff]  }
  0x29   :  { %2678 = vmatprep.subr.msk.bf16.mxu0 %vm120_vm0, %v2677_v38  ;;  %v932_v5 = vpack.c.bf16 %v2986_v0, %v2985_v63 }
  0x2a   :  { %2667 = vmatmul.mubr.msk.bf16.gmra.mrb[8].mxu1 %vm113_vm1, %v3226_v14  ;;  %v2994_v14 = vld [vmem:[%s3973_s0 + $0x96] ss:$24 sps:$4 sm:$0xff]  }
  0x2b   :  { %600 = vmatprep.mubr.bf16.mxu1 %v3119_v1 }
  0x2c   :  { %777 = vmatpush1.bf16.msra.mxu0 %v769_v40 }
  0x2d   :  { %854 = vmatprep.subr.bf16.mxu0 %v3224_v13 }
  0x2e   :  { %2661 = vmatmul.mubr.msk.bf16.gmra.mrb[4].mxu0 %vm113_vm1, %v285_v33  ;;  %v3023_v33 = vld [vmem:[%s3974_s4 + $0x84] ss:$8 sps:$4 sm:$0xff]  }
  0x2f   :  { %806 = vmatprep.mubr.bf16.mxu0 %v3119_v1 }
  0x32   :  { %2669 = vmatmul.mubr.msk.bf16.vlgmr.msra.gmra.mrb[4].mxu1 %vm113_vm1, %v560_v43  ;;  %v3038_v43 = vld [vmem:[%s3974_s4 + $0xd4] ss:$8 sps:$4 sm:$0xff]  }
  0x33   :  { %1077 = vmatpush1.bf16.msra.mxu1 %v3192_v2  ;;  %610 = vmatprep.mubr.bf16.mxu1 %v3119_v1  ;;  %v2690_v2 = vld [vmem:[%s3972_s1 + $0x40] sm:$0x11] }
  0x34   :  { %2698 = vmatprep.subr.msk.bf16.mxu1 %vm120_vm0, %v2677_v38  ;;  %v2694_v3 = vcombine.high %v2690_v2, %v2690_v2  ;;  %v2693_v4 = vcombine.low %v2690_v2, %v2690_v2  ;;  %v3027_v38 = vld [vmem:[%s3974_s4 + $0xa0] ss:$8 sps:$4 sm:$0xff]  }
  0x36   :  { %2679 = vmatmul.mubr.msk.bf16.vlgmr.msra.gmra.mrb[8].mxu0 %vm113_vm1, %v742_v46  ;;  %v958_v8 = vsel %vm120_vm0, %v2693_v4, 0 }
  0x37   :  { %1079 = vmatpush1.bf16.msra.mxu1 %v769_v40  ;;  %816 = vmatprep.mubr.bf16.mxu0 %v3119_v1  ;;  %v3030_v40 = vld [vmem:[%s3974_s4 + $0xb0] ss:$8 sps:$4 sm:$0xff]  }
  0x38   :  { %855 = vmatpush1.bf16.msra.mxu0 %v3219_v12  ;;  %1129 = vmatprep.subr.bf16.mxu1 %v3224_v13  ;;  %v2993_v13 = vld [vmem:[%s3973_s0 + $0x66] ss:$24 sps:$4 sm:$0xff]  }
  0x39   :  { %2685 = vmatprep.subr.msk.bf16.mxu0 %vm120_vm0, %v2684_v50  ;;  %v1207_v15 = vpack.c.bf16 %v2994_v14, %v2993_v13 }
  0x3a   :  { %2670 = vmatmul.mubr.msk.bf16.gmra.mrb[8].mxu1 %vm113_vm1, %v561_v52 }
  0x3b   :  { %1108 = vmatprep.mubr.bf16.mxu1 %v3119_v1 }
  0x3c   :  { %857 = vmatpush1.bf16.msra.mxu0 %v849_v55 }
  0x3d   :  { %963 = vmatprep.subr.bf16.mxu0 %v3262_v25 }
  0x3e   :  { %2680 = vmatmul.mubr.msk.bf16.gmra.mrb[12].mxu0 %vm113_vm1, %v743_v56 }
  0x3f   :  { %886 = vmatprep.mubr.bf16.mxu0 %v3119_v1 }
  0x42   :  { %2699 = vmatmul.mubr.msk.bf16.vlgmr.msra.gmra.mrb[12].mxu1 %vm113_vm1, %v931_v59 }
  0x43   :  { %1130 = vmatpush1.bf16.msra.mxu1 %v3219_v12  ;;  %1118 = vmatprep.mubr.bf16.mxu1 %v3119_v1  ;;  %v1206_v12 = vpack.c.bf16 %v2992_v11, %v2991_v10 }
  0x44   :  { %2701 = vmatprep.subr.msk.bf16.mxu1 %vm120_vm0, %v2684_v50 }
  0x46   :  { %2686 = vmatmul.mubr.msk.bf16.vlgmr.msra.gmra.mrb[8].mxu0 %vm113_vm1, %v713_v62 }
  0x47   :  { %1132 = vmatpush1.bf16.msra.mxu1 %v849_v55  ;;  %896 = vmatprep.mubr.bf16.mxu0 %v3119_v1  ;;  %v3538_v55 = vshrl.u32 %v380_v54, 7 }
  0x48   :  { %964 = vmatpush1.bf16.msra.mxu0 %v3277_v29  ;;  %1214 = vmatprep.subr.bf16.mxu1 %v3262_v25  ;;  %v3007_v25 = vld [vmem:[%s3974_s4 + $0x40] ss:$8 sps:$4 sm:$0xff]  }
  0x49   :  { %2695 = vmatprep.subr.msk.bf16.mxu0 %vm120_vm0, %v2694_v3  ;;  %v3547_v58 = vsub.s32 1, %v3538_v55 }
  0x4a   :  { %2700 = vmatmul.mubr.msk.bf16.gmra.mrb[16].mxu1 %vm113_vm1, %v932_v5 }
  0x4b   :  { %1161 = vmatprep.mubr.bf16.mxu1 %v3119_v1  ;;  %v3556_v61 = vrot.slane %v378_v57, %v3547_v58 }
  0x4c   :  { %966 = vmatpush1.bf16.msra.mxu0 %v958_v8 }
  0x4d   :  { %1701 = vmatprep.subr.bf16.mxu0 %v2997_v16 }
  0x4e   :  { %2687 = vmatmul.mubr.msk.bf16.gmra.mrb[12].mxu0 %vm113_vm1, %v714_v9 }
  0x4f   :  { %995 = vmatprep.mubr.bf16.mxu0 %v3119_v1 }
  0x52   :  { %2702 = vmatmul.mubr.msk.bf16.vlgmr.msra.gmra.mrb[12].mxu1 %vm113_vm1, %v742_v46  ;;  %v3039_v46 = vld [vmem:[%s3974_s4 + $0xe0] ss:$8 sps:$4 sm:$0xff]  }
  0x53   :  { %1215 = vmatpush1.bf16.msra.mxu1 %v3277_v29  ;;  %1171 = vmatprep.mubr.bf16.mxu1 %v3119_v1  ;;  %v3017_v29 = vld [vmem:[%s3974_s4 + $0x64] ss:$8 sps:$4 sm:$0xff]  }
  0x54   :  { %2704 = vmatprep.subr.msk.bf16.mxu1 %vm120_vm0, %v2694_v3 }
  0x56   :  { %2696 = vmatmul.mubr.msk.bf16.vlgmr.msra.gmra.mrb[8].mxu0 %vm113_vm1, %v931_v59  ;;  %v398_v59 = vld [vmem:[%s3976_s3] sm:$0x3] }
  0x57   :  { %1217 = vmatpush1.bf16.msra.mxu1 %v958_v8  ;;  %1005 = vmatprep.mubr.bf16.mxu0 %v3119_v1  ;;  %v3562_v0 = vrot.slane %v398_v59, %v3547_v58 }
  0x58   :  { %1885 = vmatprep.subr.bf16.mxu1 %v2997_v16  ;;  %1702 = vmatpush1.bf16.msra.mxu0 %v2995_v17 }
  0x59   :  { %1703 = vmatprep.subr.bf16.mxu0 %v3000_v18 }
  0x5a   :  { %2703 = vmatmul.mubr.msk.bf16.gmra.mrb[16].mxu1 %vm113_vm1, %v743_v56  ;;  %v3541_v56 = vsub.s32 0, %v3538_v55 }
  0x5b   :  { %1246 = vmatprep.mubr.bf16.mxu1 %v3119_v1 }
  0x5c   :  { %1704 = vmatpush1.bf16.msra.mxu0 %v2998_v20  ;;  %v3553_v60 = vrot.slane %v378_v57, %v3541_v56  ;;  %v3559_v62 = vrot.slane %v398_v59, %v3541_v56 }
  0x5d   :  { %1705 = vmatprep.subr.bf16.mxu0 %v3003_v21 }
  0x5e   :  { %2697 = vmatmul.mubr.msk.bf16.gmra.mrb[12].mxu0 %vm113_vm1, %v932_v5 }
  0x60   :  { %1706 = vmatpush1.bf16.msra.mxu0 %v3001_v22 }
  0x61   :  { %1707 = vmatprep.subr.bf16.mxu0 %v3006_v23 }
  0x62   :  { %2705 = vmatmul.mubr.msk.bf16.vlgmr.msra.gmra.mrb[12].mxu1 %vm113_vm1, %v1206_v12 }
  0x63   :  { %1256 = vmatprep.mubr.bf16.mxu1 %v3119_v1  ;;  %1886 = vmatpush1.bf16.msra.mxu1 %v2995_v17 }
  0x64   :  { %1887 = vmatprep.subr.bf16.mxu1 %v3000_v18  ;;  %1708 = vmatpush1.bf16.msra.mxu0 %v3004_v24 }
  0x65   :  { %1709 = vmatprep.subr.bf16.mxu0 %v3009_v26 }
  0x67   :  { %1888 = vmatpush1.bf16.msra.mxu1 %v2998_v20 }
  0x68   :  { %1889 = vmatprep.subr.bf16.mxu1 %v3003_v21  ;;  %1710 = vmatpush1.bf16.msra.mxu0 %v3007_v25 }
  0x69   :  { %1711 = vmatprep.subr.bf16.mxu0 %v3014_v28 }
  0x6a   :  { %2706 = vmatmul.mubr.msk.bf16.gmra.mrb[16].mxu1 %vm113_vm1, %v1207_v15 }
  0x6b   :  { %1890 = vmatpush1.bf16.msra.mxu1 %v3001_v22 }
  0x6c   :  { %1891 = vmatprep.subr.bf16.mxu1 %v3006_v23  ;;  %1712 = vmatpush1.bf16.msra.mxu0 %v3012_v27 }
  0x6d   :  { %1713 = vmatprep.subr.bf16.mxu0 %v3017_v29 }
  0x6f   :  { %1892 = vmatpush1.bf16.msra.mxu1 %v3004_v24 }
  0x70   :  { %1893 = vmatprep.subr.bf16.mxu1 %v3009_v26  ;;  %1714 = vmatpush1.bf16.msra.mxu0 %v3015_v30 }
  0x71   :  { %1715 = vmatprep.subr.bf16.mxu0 %v3020_v31 }
  0x73   :  { %1894 = vmatpush1.bf16.msra.mxu1 %v3007_v25 }
  0x74   :  { %1895 = vmatprep.subr.bf16.mxu1 %v3014_v28  ;;  %1716 = vmatpush1.bf16.msra.mxu0 %v3018_v32 }
  0x75   :  { %1717 = vmatprep.subr.bf16.mxu0 %v3023_v33 }
  0x77   :  { %1896 = vmatpush1.bf16.msra.mxu1 %v3012_v27 }
  0x78   :  { %1897 = vmatprep.subr.bf16.mxu1 %v3017_v29  ;;  %1718 = vmatpush1.bf16.msra.mxu0 %v3021_v34 }
  0x79   :  { %1719 = vmatprep.subr.bf16.mxu0 %v3026_v35 }
  0x7b   :  { %1898 = vmatpush1.bf16.msra.mxu1 %v3015_v30 }
  0x7c   :  { %1899 = vmatprep.subr.bf16.mxu1 %v3020_v31  ;;  %1720 = vmatpush1.bf16.msra.mxu0 %v3024_v36 }
  0x7d   :  { %1721 = vmatprep.subr.bf16.mxu0 %v3029_v37 }
  0x7f   :  { %1900 = vmatpush1.bf16.msra.mxu1 %v3018_v32 }
  0x80   :  { %1901 = vmatprep.subr.bf16.mxu1 %v3023_v33  ;;  %1722 = vmatpush1.bf16.msra.mxu0 %v3027_v38 }
  0x81   :  { %1723 = vmatprep.subr.bf16.mxu0 %v3032_v39 }
  0x83   :  { %1902 = vmatpush1.bf16.msra.mxu1 %v3021_v34 }
  0x84   :  { %1903 = vmatprep.subr.bf16.mxu1 %v3026_v35  ;;  %1724 = vmatpush1.bf16.msra.mxu0 %v3030_v40 }
  0x85   :  { %1725 = vmatprep.subr.bf16.mxu0 %v3035_v41 }
  0x87   :  { %1904 = vmatpush1.bf16.msra.mxu1 %v3024_v36 }
  0x88   :  { %1905 = vmatprep.subr.bf16.mxu1 %v3029_v37  ;;  %1726 = vmatpush1.bf16.msra.mxu0 %v3033_v42 }
  0x89   :  { %1727 = vmatprep.subr.bf16.mxu0 %v3038_v43 }
  0x8b   :  { %1906 = vmatpush1.bf16.msra.mxu1 %v3027_v38 }
  0x8c   :  { %1907 = vmatprep.subr.bf16.mxu1 %v3032_v39  ;;  %1728 = vmatpush1.bf16.msra.mxu0 %v3036_v44 }
  0x8d   :  { %1729 = vmatprep.subr.bf16.mxu0 %v3041_v45 }
  0x8f   :  { %1908 = vmatpush1.bf16.msra.mxu1 %v3030_v40 }
  0x90   :  { %1909 = vmatprep.subr.bf16.mxu1 %v3035_v41  ;;  %1730 = vmatpush1.bf16.msra.mxu0 %v3039_v46 }
  0x91   :  { %1731 = vmatprep.subr.bf16.mxu0 %v3044_v47 }
  0x93   :  { %1910 = vmatpush1.bf16.msra.mxu1 %v3033_v42 }
  0x94   :  { %1911 = vmatprep.subr.bf16.mxu1 %v3038_v43  ;;  %1732 = vmatpush1.bf16.msra.mxu0 %v3042_v48 }
  0x95   :  { %1754 = vmatprep.subr.bf16.mxu0 %v3047_v49 }
  0x97   :  { %1912 = vmatpush1.bf16.msra.mxu1 %v3036_v44 }
  0x98   :  { %1913 = vmatprep.subr.bf16.mxu1 %v3041_v45 }
  0x9b   :  { %1914 = vmatpush1.bf16.msra.mxu1 %v3039_v46 }
  0x9c   :  { %1915 = vmatprep.subr.bf16.mxu1 %v3044_v47 }
  0x9f   :  { %1916 = vmatpush1.bf16.msra.mxu1 %v3042_v48 }
  0xa0   :  { %1938 = vmatprep.subr.bf16.mxu1 %v3047_v49 }
  0xdd   :  { %v171_v50 = vpop.f32.mrb[0].mxu1 }
  0xde   :  { %v173_v51 = vpop.f32.mrb[1].mxu1 }
  0xdf   :  { %v175_v52 = vpop.f32.mrb[2].mxu1 }
  0xe0   :  { %v177_v53 = vpop.f32.mrb[3].mxu1 }
  0xf9   :  { %v351_v63 = vpop.f32.mrb[0].mxu0 }
  0xfa   :  { %v390_v2 = vmul.f32 %v3553_v60, %v351_v63  ;;  %v353_v3 = vpop.f32.mrb[1].mxu0 }
  0xfb   :  { %v391_v4 = vmul.f32 %v3556_v61, %v353_v3  ;;  %v355_v5 = vpop.f32.mrb[2].mxu0 }
  0xfc   :  { %v410_v6 = vadd.f32 %v3559_v62, %v390_v2  ;;  %v392_v7 = vmul.f32 %v3553_v60, %v355_v5  ;;  %v357_v8 = vpop.f32.mrb[3].mxu0 }
  0xfd   :  { %v411_v9 = vadd.f32 %v3562_v0, %v391_v4  ;;  %v393_v10 = vmul.f32 %v3556_v61, %v357_v8 }
  0xfe   :  { %v418_v11 = vmax.f32 %v410_v6, 0.0  ;;  %v412_v12 = vadd.f32 %v3559_v62, %v392_v7 }
  0xff   :  { %v419_v13 = vmax.f32 %v411_v9, 0.0  ;;  %v413_v14 = vadd.f32 %v3562_v0, %v393_v10 }
 0x100   :  { %v420_v15 = vmax.f32 %v412_v12, 0.0 }
 0x101   :  { %v426_v16 = vmax.f32 %v418_v11, %v419_v13  ;;  %v421_v17 = vmax.f32 %v413_v14, 0.0  ;;  %v361_v18 = vpop.f32.mrb[4].mxu0 }
 0x102   :  { %v2859_v20 = vadd.f32 %v361_v18, %v171_v50  ;;  %v363_v21 = vpop.f32.mrb[5].mxu0 }
 0x103   :  { %v427_v22 = vmax.f32 %v420_v15, %v421_v17  ;;  %v2860_v23 = vadd.f32 %v363_v21, %v173_v51  ;;  %v365_v24 = vpop.f32.mrb[6].mxu0 }
 0x104   :  { %v394_v25 = vmul.f32 %v2859_v20, %v3553_v60  ;;  %v2861_v26 = vadd.f32 %v365_v24, %v175_v52  ;;  %v367_v27 = vpop.f32.mrb[7].mxu0 }
 0x105   :  { %v395_v28 = vmul.f32 %v2860_v23, %v3556_v61  ;;  %v2862_v29 = vadd.f32 %v367_v27, %v177_v53  ;;  %v602_v30 = vpop.f32.mrb[4].mxu1 }
 0x106   :  { %v414_v31 = vadd.f32 %v3559_v62, %v394_v25  ;;  %v396_v32 = vmul.f32 %v2861_v26, %v3553_v60  ;;  %v629_v33 = vmul.f32 %v602_v30, %v3553_v60  ;;  %v604_v34 = vpop.f32.mrb[5].mxu1 }
 0x107   :  { %v415_v35 = vadd.f32 %v3562_v0, %v395_v28  ;;  %v397_v36 = vmul.f32 %v2862_v29, %v3556_v61  ;;  %v630_v37 = vmul.f32 %v604_v34, %v3556_v61  ;;  %v606_v38 = vpop.f32.mrb[6].mxu1 }
 0x108   :  { %v422_v39 = vmax.f32 %v414_v31, 0.0  ;;  %v416_v40 = vadd.f32 %v3559_v62, %v396_v32  ;;  %v637_v41 = vadd.f32 %v629_v33, %v3559_v62  ;;  %v631_v42 = vmul.f32 %v606_v38, %v3553_v60  ;;  %v608_v43 = vpop.f32.mrb[7].mxu1  ;;  %v1044_v31 = vld [vmem:[%s3976_s3] sm:$0x3] }
 0x109   :  { %v423_v44 = vmax.f32 %v415_v35, 0.0  ;;  %v417_v45 = vadd.f32 %v3562_v0, %v397_v36  ;;  %v638_v46 = vadd.f32 %v630_v37, %v3562_v0  ;;  %v632_v47 = vmul.f32 %v608_v43, %v3556_v61 }
 0x10a   :  { %v424_v48 = vmax.f32 %v416_v40, 0.0  ;;  %v645_v49 = vmax.f32 %v637_v41, 0.0  ;;  %v639_v50 = vadd.f32 %v631_v42, %v3559_v62  ;;  %v3612_v34 = vrot.slane %v1044_v31, %v3541_v56 }
 0x10b   :  { %v428_v51 = vmax.f32 %v422_v39, %v423_v44  ;;  %v425_v52 = vmax.f32 %v417_v45, 0.0  ;;  %v646_v53 = vmax.f32 %v638_v46, 0.0  ;;  %v640_v54 = vadd.f32 %v632_v47, %v3562_v0 }
 0x10c   :  { %v647_v57 = vmax.f32 %v639_v50, 0.0  ;;  %v3615_v36 = vrot.slane %v1044_v31, %v3547_v58 }
 0x10d   :  { %v429_v59 = vmax.f32 %v424_v48, %v425_v52  ;;  %v653_v63 = vmax.f32 %v645_v49, %v646_v53  ;;  %v648_v2 = vmax.f32 %v640_v54, 0.0  ;;  %v612_v3 = vpop.f32.mrb[8].mxu1 }
 0x10e   :  { %v633_v4 = vmul.f32 %v612_v3, %v3553_v60  ;;  %v614_v5 = vpop.f32.mrb[9].mxu1 }
 0x10f   :  { %v657_v6 = vmax.f32 %v426_v16, %v653_v63  ;;  %v654_v7 = vmax.f32 %v647_v57, %v648_v2  ;;  %v634_v8 = vmul.f32 %v614_v5, %v3556_v61  ;;  %v616_v9 = vpop.f32.mrb[10].mxu1 }
 0x110   :  { %v641_v10 = vadd.f32 %v633_v4, %v3559_v62  ;;  %v635_v11 = vmul.f32 %v616_v9, %v3553_v60  ;;  %v618_v12 = vpop.f32.mrb[11].mxu1 }
 0x111   :  { %v665_v13 = vcombine.high %v657_v6, %v657_v6  ;;  %673 = vst [vmem:[#allocation2] sm:$0xf] %v657_v6  ;;  %v658_v14 = vmax.f32 %v427_v22, %v654_v7  ;;  %v642_v15 = vadd.f32 %v634_v8, %v3562_v0  ;;  %v636_v17 = vmul.f32 %v618_v12, %v3556_v61 }
 0x112   :  { %v649_v18 = vmax.f32 %v641_v10, 0.0  ;;  %v643_v20 = vadd.f32 %v635_v11, %v3559_v62 }
 0x113   :  { %674 = vst [vmem:[#allocation2 + $0x8] sm:$0xf] %v665_v13  ;;  %v666_v16 = vcombine.high %v658_v14, %v658_v14  ;;  %675 = vst [vmem:[#allocation2 + $0x10] sm:$0xf] %v658_v14  ;;  %v650_v21 = vmax.f32 %v642_v15, 0.0  ;;  %v644_v23 = vadd.f32 %v636_v17, %v3562_v0 }
 0x114   :  { %v651_v24 = vmax.f32 %v643_v20, 0.0  ;;  %v1024_v0 = vld [vmem:[%s3975_s2] sm:$0x3] }
 0x115   :  { %676 = vst [vmem:[#allocation2 + $0x18] sm:$0xf] %v666_v16  ;;  %v655_v60 = vmax.f32 %v649_v18, %v650_v21  ;;  %v652_v25 = vmax.f32 %v644_v23, 0.0  ;;  %v3606_v32 = vrot.slane %v1024_v0, %v3541_v56  ;;  %v3609_v33 = vrot.slane %v1024_v0, %v3547_v58 }
 0x117   :  { %v659_v26 = vmax.f32 %v428_v51, %v655_v60  ;;  %v656_v27 = vmax.f32 %v651_v24, %v652_v25 }
 0x119   :  { %v667_v22 = vcombine.high %v659_v26, %v659_v26  ;;  %677 = vst [vmem:[#allocation2 + $0x20] sm:$0xf] %v659_v26  ;;  %v660_v28 = vmax.f32 %v429_v59, %v656_v27 }
 0x11a   :  { %v3010_v29 = vld [vmem:[#allocation2] ss:$8 sps:$4 sm:$0xff]  }
 0x11b   :  { %678 = vst [vmem:[#allocation2 + $0x28] sm:$0xf] %v667_v22  ;;  %v668_v61 = vcombine.high %v660_v28, %v660_v28  ;;  %679 = vst [vmem:[#allocation2 + $0x30] sm:$0xf] %v660_v28 }
 0x11c   :  { %v3011_v62 = vld [vmem:[#allocation2 + $0x10] ss:$8 sps:$4 sm:$0xff]  }
 0x11d   :  { %680 = vst [vmem:[#allocation2 + $0x38] sm:$0xf] %v668_v61  ;;  %v3596_v30 = vpack.c.bf16 %v3011_v62, %v3010_v29 }
 0x11f   :  { %1733 = vmatprep.mubr.bf16.mxu0 %v3596_v30 }
 0x129   :  { %v997_v35 = vpop.f32.mrb[8].mxu0 }
 0x12a   :  { %v1036_v37 = vmul.f32 %v3606_v32, %v997_v35  ;;  %v999_v38 = vpop.f32.mrb[9].mxu0 }
 0x12b   :  { %v1037_v39 = vmul.f32 %v3609_v33, %v999_v38  ;;  %v1001_v40 = vpop.f32.mrb[10].mxu0 }
 0x12c   :  { %v1056_v41 = vadd.f32 %v3612_v34, %v1036_v37  ;;  %v1038_v42 = vmul.f32 %v3606_v32, %v1001_v40  ;;  %v1003_v43 = vpop.f32.mrb[11].mxu0 }
 0x12d   :  { %v1057_v44 = vadd.f32 %v3615_v36, %v1037_v39  ;;  %v1039_v45 = vmul.f32 %v3609_v33, %v1003_v43 }
 0x12e   :  { %v1064_v46 = vmax.f32 %v1056_v41, 0.0  ;;  %v1058_v47 = vadd.f32 %v3612_v34, %v1038_v42 }
 0x12f   :  { %v1065_v48 = vmax.f32 %v1057_v44, 0.0  ;;  %v1059_v49 = vadd.f32 %v3615_v36, %v1039_v45 }
 0x130   :  { %v1066_v50 = vmax.f32 %v1058_v47, 0.0 }
 0x131   :  { %v1072_v51 = vmax.f32 %v1064_v46, %v1065_v48  ;;  %v1067_v52 = vmax.f32 %v1059_v49, 0.0  ;;  %v1007_v53 = vpop.f32.mrb[12].mxu0 }
 0x132   :  { %v1040_v54 = vmul.f32 %v3606_v32, %v1007_v53  ;;  %v1009_v57 = vpop.f32.mrb[13].mxu0 }
 0x133   :  { %v1073_v59 = vmax.f32 %v1066_v50, %v1067_v52  ;;  %v1041_v63 = vmul.f32 %v3609_v33, %v1009_v57  ;;  %v1011_v2 = vpop.f32.mrb[14].mxu0 }
 0x134   :  { %v1060_v3 = vadd.f32 %v3612_v34, %v1040_v54  ;;  %v1042_v4 = vmul.f32 %v3606_v32, %v1011_v2  ;;  %v1013_v5 = vpop.f32.mrb[15].mxu0 }
 0x135   :  { %v1061_v6 = vadd.f32 %v3615_v36, %v1041_v63  ;;  %v1043_v7 = vmul.f32 %v3609_v33, %v1013_v5  ;;  %v1248_v8 = vpop.f32.mrb[12].mxu1 }
 0x136   :  { %v1068_v9 = vmax.f32 %v1060_v3, 0.0  ;;  %v1062_v10 = vadd.f32 %v3612_v34, %v1042_v4  ;;  %v1275_v11 = vmul.f32 %v1248_v8, %v3606_v32  ;;  %v1250_v12 = vpop.f32.mrb[13].mxu1  ;;  %v3053_v4 = vld [vmem:[#allocation2 + $0x30] ss:$8 sps:$4 sm:$0xff]  }
 0x137   :  { %v1069_v13 = vmax.f32 %v1061_v6, 0.0  ;;  %v1063_v14 = vadd.f32 %v3615_v36, %v1043_v7  ;;  %v1276_v15 = vmul.f32 %v1250_v12, %v3609_v33  ;;  %v1252_v17 = vpop.f32.mrb[14].mxu1 }
 0x138   :  { %v1070_v18 = vmax.f32 %v1062_v10, 0.0  ;;  %v1283_v20 = vadd.f32 %v1275_v11, %v3612_v34  ;;  %v1277_v16 = vmul.f32 %v1252_v17, %v3606_v32  ;;  %v1254_v21 = vpop.f32.mrb[15].mxu1  ;;  %v3056_v11 = vld [vmem:[%s3974_s4 + $0x114] ss:$8 sps:$4 sm:$0xff]  }
 0x139   :  { %v1074_v23 = vmax.f32 %v1068_v9, %v1069_v13  ;;  %v1071_v24 = vmax.f32 %v1063_v14, 0.0  ;;  %v1284_v60 = vadd.f32 %v1276_v15, %v3615_v36  ;;  %v1278_v25 = vmul.f32 %v1254_v21, %v3609_v33  ;;  %v3052_v9 = vld [vmem:[#allocation2 + $0x20] ss:$8 sps:$4 sm:$0xff]   ;;  %v3054_v13 = vld [vmem:[%s3974_s4 + $0x110] ss:$8 sps:$4 sm:$0xff]  }
 0x13a   :  { %v1291_v26 = vmax.f32 %v1283_v20, 0.0  ;;  %v1285_v27 = vadd.f32 %v1277_v16, %v3612_v34  ;;  %v1411_v12 = vpack.c.bf16 %v3053_v4, %v3052_v9  ;;  %v3059_v14 = vld [vmem:[%s3974_s4 + $0x124] ss:$8 sps:$4 sm:$0xff]   ;;  %v3114_v9 = vld [vmem:[%s3977_s7 + $0xb8] sm:$0xff]  }
 0x13b   :  { %v1075_v22 = vmax.f32 %v1070_v18, %v1071_v24  ;;  %v1292_v28 = vmax.f32 %v1284_v60, 0.0  ;;  %v1286_v61 = vadd.f32 %v1278_v25, %v3615_v36  ;;  %v3057_v18 = vld [vmem:[%s3974_s4 + $0x120] ss:$8 sps:$4 sm:$0xff]   ;;  %v3064_v24 = vld [vmem:[%s3974_s4 + $0x130] ss:$8 sps:$4 sm:$0xff]  }
 0x13c   :  { %v1293_v29 = vmax.f32 %v1285_v27, 0.0  ;;  %v3069_v60 = vld [vmem:[%s3974_s4 + $0x144] ss:$8 sps:$4 sm:$0xff]   ;;  %v3067_v25 = vld [vmem:[%s3974_s4 + $0x140] ss:$8 sps:$4 sm:$0xff]  }
 0x13d   :  { %v1299_v62 = vmax.f32 %v1291_v26, %v1292_v28  ;;  %v1294_v0 = vmax.f32 %v1286_v61, 0.0  ;;  %v1258_v31 = vpop.f32.mrb[16].mxu1  ;;  %v3072_v26 = vld [vmem:[%s3974_s4 + $0x154] ss:$8 sps:$4 sm:$0xff]   ;;  %v3070_v27 = vld [vmem:[%s3974_s4 + $0x150] ss:$8 sps:$4 sm:$0xff]  }
 0x13e   :  { %v1279_v35 = vmul.f32 %v1258_v31, %v3606_v32  ;;  %v1260_v37 = vpop.f32.mrb[17].mxu1  ;;  %v3073_v28 = vld [vmem:[%s3974_s4 + $0x160] ss:$8 sps:$4 sm:$0xff]   ;;  %v3078_v61 = vld [vmem:[%s3974_s4 + $0x174] ss:$8 sps:$4 sm:$0xff]  }
 0x13f   :  { %v1303_v38 = vmax.f32 %v1072_v51, %v1299_v62  ;;  %v1300_v39 = vmax.f32 %v1293_v29, %v1294_v0  ;;  %v1280_v40 = vmul.f32 %v1260_v37, %v3609_v33  ;;  %v1262_v41 = vpop.f32.mrb[18].mxu1  ;;  %v3076_v29 = vld [vmem:[%s3974_s4 + $0x170] ss:$8 sps:$4 sm:$0xff]   ;;  %v3083_v62 = vld [vmem:[%s3977_s7 + $0x40] sm:$0xff]   ;;  %v3106_v4 = vld [vmem:[%s3977_s7 + $0xa8] sm:$0xff]  }
 0x140   :  { %v1287_v42 = vadd.f32 %v1279_v35, %v3612_v34  ;;  %v1281_v43 = vmul.f32 %v1262_v41, %v3606_v32  ;;  %v1264_v44 = vpop.f32.mrb[19].mxu1  ;;  %v3080_v0 = vld [vmem:[#allocation2 + $0x11] ss:$8 sps:$4 sm:$0xff]   ;;  %v3084_v31 = vld [vmem:[%s3977_s7 + $0xc0] sm:$0xff]  }
 0x141   :  { %v1311_v45 = vcombine.high %v1303_v38, %v1303_v38  ;;  %1319 = vst [vmem:[#allocation3 + $0x1] sm:$0xf] %v1303_v38  ;;  %v1304_v46 = vmax.f32 %v1073_v59, %v1300_v39  ;;  %v1288_v47 = vadd.f32 %v1280_v40, %v3615_v36  ;;  %v1282_v48 = vmul.f32 %v1264_v44, %v3609_v33  ;;  %v3079_v35 = vld [vmem:[#allocation2 + $0x1] ss:$8 sps:$4 sm:$0xff]   ;;  %v3082_v38 = vld [vmem:[#allocation2 + $0x31] ss:$8 sps:$4 sm:$0xff]  }
 0x142   :  { %v1295_v49 = vmax.f32 %v1287_v42, 0.0  ;;  %v1289_v50 = vadd.f32 %v1281_v43, %v3612_v34  ;;  %v1883_v37 = vpack.c.bf16 %v3080_v0, %v3079_v35  ;;  %v3081_v39 = vld [vmem:[#allocation2 + $0x21] ss:$8 sps:$4 sm:$0xff]  }
 0x143   :  { %1320 = vst [vmem:[#allocation3 + $0x9] sm:$0xf] %v1311_v45  ;;  %v1312_v51 = vcombine.high %v1304_v46, %v1304_v46  ;;  %1321 = vst [vmem:[#allocation3 + $0x11] sm:$0xf] %v1304_v46  ;;  %v1296_v52 = vmax.f32 %v1288_v47, 0.0  ;;  %v1290_v53 = vadd.f32 %v1282_v48, %v3615_v36  ;;  %v1884_v40 = vpack.c.bf16 %v3082_v38, %v3081_v39  ;;  %v3085_v41 = vld [vmem:[%s3977_s7] sm:$0xff]  }
 0x144   :  { %v1297_v54 = vmax.f32 %v1289_v50, 0.0  ;;  %v3045_v36 = vld [vmem:[%s3974_s4 + $0x100] ss:$8 sps:$4 sm:$0xff]   ;;  %v3091_v46 = vld [vmem:[%s3977_s7 + $0x50] sm:$0xff]   ;;  %v3095_v50 = vld [vmem:[%s3977_s7 + $0x58] sm:$0xff]  }
 0x145   :  { %1322 = vst [vmem:[#allocation3 + $0x19] sm:$0xf] %v1312_v51  ;;  %v1301_v32 = vmax.f32 %v1295_v49, %v1296_v52  ;;  %v1298_v57 = vmax.f32 %v1290_v53, 0.0  ;;  %v3086_v42 = vld [vmem:[%s3977_s7 + $0x80] sm:$0xff]   ;;  %v3087_v43 = vld [vmem:[%s3977_s7 + $0x48] sm:$0xff]   ;;  %v3092_v47 = vld [vmem:[%s3977_s7 + $0xd0] sm:$0xff]  }
 0x146   :  { %v3089_v44 = vld [vmem:[%s3977_s7 + $0x8] sm:$0xff]   ;;  %v3093_v48 = vld [vmem:[%s3977_s7 + $0x10] sm:$0xff]   ;;  %v3096_v51 = vld [vmem:[%s3977_s7 + $0xd8] sm:$0xff]  }
 0x147   :  { %v1305_v63 = vmax.f32 %v1074_v23, %v1301_v32  ;;  %v1302_v2 = vmax.f32 %v1297_v54, %v1298_v57  ;;  %v3090_v45 = vld [vmem:[%s3977_s7 + $0x88] sm:$0xff]   ;;  %v3094_v49 = vld [vmem:[%s3977_s7 + $0x90] sm:$0xff]   ;;  %v3097_v52 = vld [vmem:[%s3977_s7 + $0x18] sm:$0xff]  }
 0x148   :  { %v3098_v53 = vld [vmem:[%s3977_s7 + $0x98] sm:$0xff]   ;;  %v3099_v54 = vld [vmem:[%s3977_s7 + $0x60] sm:$0xff]  }
 0x149   :  { %v1313_v59 = vcombine.high %v1305_v63, %v1305_v63  ;;  %1323 = vst [vmem:[#allocation3 + $0x21] sm:$0xf] %v1305_v63  ;;  %v1306_v3 = vmax.f32 %v1075_v22, %v1302_v2  ;;  %v3075_v22 = vld [vmem:[%s3974_s4 + $0x164] ss:$8 sps:$4 sm:$0xff]  }
 0x14a   :  { %v3048_v34 = vld [vmem:[#allocation3] ss:$8 sps:$4 sm:$0xff]  }
 0x14b   :  { %1324 = vst [vmem:[#allocation3 + $0x29] sm:$0xf] %v1313_v59  ;;  %v1314_v33 = vcombine.high %v1306_v3, %v1306_v3  ;;  %1325 = vst [vmem:[#allocation3 + $0x31] sm:$0xf] %v1306_v3  ;;  %v3050_v6 = vld [vmem:[#allocation3 + $0x1] ss:$8 sps:$4 sm:$0xff]  }
 0x14c   :  { %v3049_v5 = vld [vmem:[#allocation3 + $0x10] ss:$8 sps:$4 sm:$0xff]   ;;  %v3100_v32 = vld [vmem:[%s3977_s7 + $0xe0] sm:$0xff]   ;;  %v3103_v2 = vld [vmem:[%s3977_s7 + $0x68] sm:$0xff]  }
 0x14d   :  { %1326 = vst [vmem:[#allocation3 + $0x39] sm:$0xf] %v1314_v33  ;;  %v3051_v7 = vld [vmem:[#allocation3 + $0x11] ss:$8 sps:$4 sm:$0xff]   ;;  %v1407_v8 = vpack.c.bf16 %v3049_v5, %v3048_v34  ;;  %v3101_v57 = vld [vmem:[%s3977_s7 + $0x20] sm:$0xff]   ;;  %v3104_v59 = vld [vmem:[%s3977_s7 + $0xe8] sm:$0xff]  }
 0x14e   :  { %v3652_v10 = vpack.c.bf16 %v3051_v7, %v3050_v6  ;;  %v3102_v63 = vld [vmem:[%s3977_s7 + $0xa0] sm:$0xff]   ;;  %v3105_v3 = vld [vmem:[%s3977_s7 + $0x28] sm:$0xff]   ;;  %v3107_v33 = vld [vmem:[%s3977_s7 + $0x70] sm:$0xff]  }
 0x14f   :  { %1734 = vmatmul.mubr.bf16.vlgmr.msra.gmra.mrb[16].mxu0 %v1407_v8  ;;  %v3108_v34 = vld [vmem:[%s3977_s7 + $0xf0] sm:$0xff]   ;;  %v3111_v6 = vld [vmem:[%s3977_s7 + $0x78] sm:$0xff]  }
 0x150   :  { %1755 = vmatpush1.bf16.msra.mxu0 %v3045_v36  ;;  %1917 = vmatprep.mubr.bf16.mxu1 %v3652_v10  ;;  %v3109_v5 = vld [vmem:[%s3977_s7 + $0x30] sm:$0xff]   ;;  %v3112_v7 = vld [vmem:[%s3977_s7 + $0xf8] sm:$0xff]  }
 0x151   :  { %1743 = vmatprep.mubr.bf16.mxu0 %v1411_v12  ;;  %1918 = vmatmul.mubr.bf16.vlgmr.msra.gmra.mrb[20].mxu1 %v3596_v30  ;;  %v3066_v30 = vld [vmem:[%s3974_s4 + $0x134] ss:$8 sps:$4 sm:$0xff]  }
 0x152   :  { %1939 = vmatpush1.bf16.msra.mxu1 %v3045_v36  ;;  %1756 = vmatprep.subr.bf16.mxu0 %v3056_v11  ;;  %v3060_v15 = vld [vmem:[#allocation3 + $0x20] ss:$8 sps:$4 sm:$0xff]   ;;  %v3110_v36 = vld [vmem:[%s3977_s7 + $0xb0] sm:$0xff]   ;;  %v3113_v8 = vld [vmem:[%s3977_s7 + $0x38] sm:$0xff]  }
 0x153   :  { %1940 = vmatprep.subr.bf16.mxu1 %v3056_v11  ;;  %v3062_v20 = vld [vmem:[#allocation3 + $0x21] ss:$8 sps:$4 sm:$0xff]  }
 0x154   :  { %v3061_v17 = vld [vmem:[#allocation3 + $0x30] ss:$8 sps:$4 sm:$0xff]   ;;  %1757 = vmatpush1.bf16.msra.mxu0 %v3054_v13  ;;  %v1827_v11 = vld [vmem:[%s3980_s6] sm:$0x3] }
 0x155   :  { %v3063_v16 = vld [vmem:[#allocation3 + $0x31] ss:$8 sps:$4 sm:$0xff]   ;;  %1758 = vmatprep.subr.bf16.mxu0 %v3059_v14  ;;  %v1410_v21 = vpack.c.bf16 %v3061_v17, %v3060_v15  ;;  %v3816_v17 = vrot.slane %v1827_v11, %v3547_v58 }
 0x156   :  { %1941 = vmatpush1.bf16.msra.mxu1 %v3054_v13  ;;  %v1412_v23 = vpack.c.bf16 %v3063_v16, %v3062_v20 }
 0x157   :  { %1744 = vmatmul.mubr.bf16.gmra.mrb[20].mxu0 %v1410_v21  ;;  %1942 = vmatprep.subr.bf16.mxu1 %v3059_v14  ;;  %v3813_v14 = vrot.slane %v1827_v11, %v3541_v56 }
 0x158   :  { %1759 = vmatpush1.bf16.msra.mxu0 %v3057_v18  ;;  %1927 = vmatprep.mubr.bf16.mxu1 %v1412_v23 }
 0x159   :  { %1928 = vmatmul.mubr.bf16.gmra.mrb[24].mxu1 %v1411_v12  ;;  %1760 = vmatprep.subr.bf16.mxu0 %v3066_v30 }
 0x15a   :  { %1943 = vmatpush1.bf16.msra.mxu1 %v3057_v18  ;;  %1786 = vmatprep.mubr.bf16.mxu0 %v3119_v1 }
 0x15b   :  { %1944 = vmatprep.subr.bf16.mxu1 %v3066_v30  ;;  %1970 = vmatprep.mubr.bf16.mxu1 %v3119_v1 }
 0x15c   :  { %1761 = vmatpush1.bf16.msra.mxu0 %v3064_v24 }
 0x15d   :  { %1762 = vmatprep.subr.bf16.mxu0 %v3069_v60 }
 0x15e   :  { %1945 = vmatpush1.bf16.msra.mxu1 %v3064_v24 }
 0x15f   :  { %1946 = vmatprep.subr.bf16.mxu1 %v3069_v60 }
 0x160   :  { %1763 = vmatpush1.bf16.msra.mxu0 %v3067_v25 }
 0x161   :  { %1764 = vmatprep.subr.bf16.mxu0 %v3072_v26 }
 0x162   :  { %1947 = vmatpush1.bf16.msra.mxu1 %v3067_v25 }
 0x163   :  { %1948 = vmatprep.subr.bf16.mxu1 %v3072_v26 }
 0x164   :  { %1765 = vmatpush1.bf16.msra.mxu0 %v3070_v27 }
 0x165   :  { %1766 = vmatprep.subr.bf16.mxu0 %v3075_v22 }
 0x166   :  { %1949 = vmatpush1.bf16.msra.mxu1 %v3070_v27 }
 0x167   :  { %1950 = vmatprep.subr.bf16.mxu1 %v3075_v22 }
 0x168   :  { %1767 = vmatpush1.bf16.msra.mxu0 %v3073_v28 }
 0x169   :  { %1768 = vmatprep.subr.bf16.mxu0 %v3078_v61 }
 0x16a   :  { %1951 = vmatpush1.bf16.msra.mxu1 %v3073_v28 }
 0x16b   :  { %1952 = vmatprep.subr.bf16.mxu1 %v3078_v61 }
 0x16c   :  { %1769 = vmatpush1.bf16.msra.mxu0 %v3076_v29 }
 0x16d   :  { %2794 = vmatprep.subr.bf16.mxu0 %v3083_v62 }
 0x16e   :  { %1953 = vmatpush1.bf16.msra.mxu1 %v3076_v29 }
 0x16f   :  { %1787 = vmatmul.mubr.bf16.vlgmr.msra.gmra.mrb[16].mxu0 %v3652_v10  ;;  %2816 = vmatprep.subr.bf16.mxu1 %v3084_v31  ;;  %v1807_v10 = vld [vmem:[%s3979_s5] sm:$0x3] }
 0x170   :  { %1796 = vmatprep.mubr.bf16.mxu0 %v3119_v1  ;;  %2795 = vmatpush3.bf16.msra.mxu0 %v3085_v41  ;;  %v3807_v12 = vrot.slane %v1807_v10, %v3541_v56  ;;  %v3810_v13 = vrot.slane %v1807_v10, %v3547_v58 }
 0x171   :  { %1971 = vmatmul.mubr.bf16.vlgmr.msra.gmra.mrb[20].mxu1 %v1883_v37  ;;  %2796 = vmatprep.subr.bf16.mxu0 %v3087_v43 }
 0x172   :  { %1980 = vmatprep.mubr.bf16.mxu1 %v3119_v1  ;;  %2817 = vmatpush3.bf16.msra.mxu1 %v3086_v42  ;;  %v3088_v1 = vld [vmem:[%s3977_s7 + $0xc8] sm:$0xff]  }
 0x173   :  { %2818 = vmatprep.subr.bf16.mxu1 %v3088_v1 }
 0x174   :  { %2797 = vmatpush3.bf16.msra.mxu0 %v3089_v44 }
 0x175   :  { %2798 = vmatprep.subr.bf16.mxu0 %v3091_v46 }
 0x176   :  { %2819 = vmatpush3.bf16.msra.mxu1 %v3090_v45 }
 0x177   :  { %1797 = vmatmul.mubr.bf16.gmra.mrb[20].mxu0 %v1412_v23  ;;  %2820 = vmatprep.subr.bf16.mxu1 %v3092_v47 }
 0x178   :  { %2799 = vmatpush3.bf16.msra.mxu0 %v3093_v48  ;;  %v3835_v48 = vsub.s32 2, %v3538_v55 }
 0x179   :  { %1981 = vmatmul.mubr.bf16.gmra.mrb[24].mxu1 %v1884_v40  ;;  %2800 = vmatprep.subr.bf16.mxu0 %v3095_v50 }
 0x17a   :  { %2821 = vmatpush3.bf16.msra.mxu1 %v3094_v49  ;;  %v3838_v49 = vsub.s32 3, %v3538_v55 }
 0x17b   :  { %2822 = vmatprep.subr.bf16.mxu1 %v3096_v51 }
 0x17c   :  { %2801 = vmatpush3.bf16.msra.mxu0 %v3097_v52 }
 0x17d   :  { %2802 = vmatprep.subr.bf16.mxu0 %v3099_v54 }
 0x17e   :  { %2823 = vmatpush3.bf16.msra.mxu1 %v3098_v53 }
 0x17f   :  { %2824 = vmatprep.subr.bf16.mxu1 %v3100_v32 }
 0x180   :  { %2803 = vmatpush3.bf16.msra.mxu0 %v3101_v57 }
 0x181   :  { %2804 = vmatprep.subr.bf16.mxu0 %v3103_v2 }
 0x182   :  { %2825 = vmatpush3.bf16.msra.mxu1 %v3102_v63 }
 0x183   :  { %2826 = vmatprep.subr.bf16.mxu1 %v3104_v59 }
 0x184   :  { %2805 = vmatpush3.bf16.msra.mxu0 %v3105_v3 }
 0x185   :  { %2806 = vmatprep.subr.bf16.mxu0 %v3107_v33 }
 0x186   :  { %2827 = vmatpush3.bf16.msra.mxu1 %v3106_v4 }
 0x187   :  { %2828 = vmatprep.subr.bf16.mxu1 %v3108_v34 }
 0x188   :  { %2807 = vmatpush3.bf16.msra.mxu0 %v3109_v5 }
 0x189   :  { %2808 = vmatprep.subr.bf16.mxu0 %v3111_v6 }
 0x18a   :  { %2829 = vmatpush3.bf16.msra.mxu1 %v3110_v36 }
 0x18b   :  { %2830 = vmatprep.subr.bf16.mxu1 %v3112_v7 }
 0x18c   :  { %2809 = vmatpush3.bf16.msra.mxu0 %v3113_v8 }
 0x18d   :  { %2843 = vmatprep.subr.bf16.mxu0 %v3120_v19 }
 0x18e   :  { %2831 = vmatpush3.bf16.msra.mxu1 %v3114_v9 }
 0x242   :  { %v1788_v15 = vpop.f32.mrb[16].mxu0 }
 0x243   :  { %v1819_v18 = vmul.f32 %v3807_v12, %v1788_v15  ;;  %v1790_v20 = vpop.f32.mrb[17].mxu0 }
 0x244   :  { %v1820_v16 = vmul.f32 %v3810_v13, %v1790_v20  ;;  %v1972_v21 = vpop.f32.mrb[20].mxu1  ;;  %v1792_v30 = vpop.f32.mrb[18].mxu0 }
 0x245   :  { %v1839_v23 = vadd.f32 %v3813_v14, %v1819_v18  ;;  %v1991_v24 = vmul.f32 %v1972_v21, %v3807_v12  ;;  %v1821_v60 = vmul.f32 %v3807_v12, %v1792_v30  ;;  %v1974_v25 = vpop.f32.mrb[21].mxu1  ;;  %v1794_v26 = vpop.f32.mrb[19].mxu0 }
 0x246   :  { %v1840_v27 = vadd.f32 %v3816_v17, %v1820_v16  ;;  %v1992_v22 = vmul.f32 %v1974_v25, %v3810_v13  ;;  %v1822_v28 = vmul.f32 %v3810_v13, %v1794_v26  ;;  %v1976_v61 = vpop.f32.mrb[22].mxu1 }
 0x247   :  { %v1847_v29 = vmax.f32 %v1839_v23, 0.0  ;;  %v1999_v62 = vadd.f32 %v1991_v24, %v3813_v14  ;;  %v1841_v0 = vadd.f32 %v3813_v14, %v1821_v60  ;;  %v1993_v31 = vmul.f32 %v1976_v61, %v3807_v12  ;;  %v1978_v35 = vpop.f32.mrb[23].mxu1 }
 0x248   :  { %v1848_v37 = vmax.f32 %v1840_v27, 0.0  ;;  %v2000_v38 = vadd.f32 %v1992_v22, %v3816_v17  ;;  %v1842_v39 = vadd.f32 %v3816_v17, %v1822_v28  ;;  %v1994_v40 = vmul.f32 %v1978_v35, %v3810_v13 }
 0x249   :  { %v2007_v41 = vmax.f32 %v1999_v62, 0.0  ;;  %v1849_v42 = vmax.f32 %v1841_v0, 0.0  ;;  %v2001_v43 = vadd.f32 %v1993_v31, %v3813_v14 }
 0x24a   :  { %v1855_v1 = vmax.f32 %v1847_v29, %v1848_v37  ;;  %v2008_v44 = vmax.f32 %v2000_v38, 0.0  ;;  %v1850_v45 = vmax.f32 %v1842_v39, 0.0  ;;  %v2002_v46 = vadd.f32 %v1994_v40, %v3816_v17  ;;  %v1798_v47 = vpop.f32.mrb[20].mxu0 }
 0x24b   :  { %v2009_v50 = vmax.f32 %v2001_v43, 0.0  ;;  %v1823_v51 = vmul.f32 %v3807_v12, %v1798_v47  ;;  %v1800_v52 = vpop.f32.mrb[21].mxu0 }
 0x24c   :  { %v2015_v53 = vmax.f32 %v2007_v41, %v2008_v44  ;;  %v1856_v54 = vmax.f32 %v1849_v42, %v1850_v45  ;;  %v2010_v32 = vmax.f32 %v2002_v46, 0.0  ;;  %v1824_v57 = vmul.f32 %v3810_v13, %v1800_v52  ;;  %v1982_v63 = vpop.f32.mrb[24].mxu1  ;;  %v1802_v2 = vpop.f32.mrb[22].mxu0 }
 0x24d   :  { %v1843_v59 = vadd.f32 %v3813_v14, %v1823_v51  ;;  %v1995_v3 = vmul.f32 %v1982_v63, %v3807_v12  ;;  %v1825_v4 = vmul.f32 %v3807_v12, %v1802_v2  ;;  %v1984_v55 = vpop.f32.mrb[25].mxu1  ;;  %v1804_v33 = vpop.f32.mrb[23].mxu0 }
 0x24e   :  { %v3845_v34 = vmax.f32 %v1855_v1, %v2015_v53  ;;  %v2016_v5 = vmax.f32 %v2009_v50, %v2010_v32  ;;  %v1844_v36 = vadd.f32 %v3816_v17, %v1824_v57  ;;  %v1996_v6 = vmul.f32 %v1984_v55, %v3810_v13  ;;  %v1986_v7 = vpop.f32.mrb[26].mxu1 }
 0x24f   :  { %v1851_v8 = vmax.f32 %v1843_v59, 0.0  ;;  %v2003_v9 = vadd.f32 %v1995_v3, %v3813_v14  ;;  %v1845_v10 = vadd.f32 %v3813_v14, %v1825_v4  ;;  %v1988_v11 = vpop.f32.mrb[27].mxu1  ;;  %v1826_v16 = vmul.f32 %v3810_v13, %v1804_v33 }
 0x250   :  { %v3853_v15 = vcombine.high %v3845_v34, %v3845_v34  ;;  %v2034_v18 = vrot.slane %v3845_v34, %v3541_v56  ;;  %v2081_v20 = vrot.slane %v3845_v34, %v3547_v58  ;;  %v2121_v21 = vrot.slane %v3845_v34, %v3835_v48 }
 0x251   :  { %v2161_v30 = vrot.slane %v3845_v34, %v3838_v49  ;;  %v3864_v23 = vmax.f32 %v1856_v54, %v2016_v5  ;;  %v1852_v24 = vmax.f32 %v1844_v36, 0.0  ;;  %v2011_v26 = vmax.f32 %v2003_v9, 0.0 }
 0x252   :  { %v2038_v60 = vrot.slane %v3853_v15, %v3541_v56  ;;  %v2125_v25 = vrot.slane %v3853_v15, %v3835_v48  ;;  %v2004_v27 = vadd.f32 %v1996_v6, %v3816_v17  ;;  %v1853_v29 = vmax.f32 %v1845_v10, 0.0 }
 0x253   :  { %v3873_v22 = vcombine.high %v3864_v23, %v3864_v23  ;;  %v2042_v28 = vrot.slane %v3864_v23, %v3541_v56  ;;  %v2089_v61 = vrot.slane %v3864_v23, %v3547_v58  ;;  %v2169_v62 = vrot.slane %v3864_v23, %v3838_v49 }
 0x254   :  { %v1857_v0 = vmax.f32 %v1851_v8, %v1852_v24  ;;  %v2012_v31 = vmax.f32 %v2004_v27, 0.0  ;;  %v1846_v35 = vadd.f32 %v3816_v17, %v1826_v16  ;;  %v1997_v37 = vmul.f32 %v1986_v7, %v3807_v12 }
 0x255   :  { %v1998_v38 = vmul.f32 %v1988_v11, %v3810_v13  ;;  %v2085_v39 = vrot.slane %v3853_v15, %v3547_v58  ;;  %v2093_v40 = vrot.slane %v3873_v22, %v3547_v58  ;;  %v2129_v41 = vrot.slane %v3864_v23, %v3835_v48 }
 0x256   :  { %v2017_v42 = vmax.f32 %v2011_v26, %v2012_v31  ;;  %v1854_v43 = vmax.f32 %v1846_v35, 0.0  ;;  %v2165_v1 = vrot.slane %v3853_v15, %v3838_v49  ;;  %v2005_v44 = vadd.f32 %v1997_v37, %v3813_v14 }
 0x257   :  { %v2006_v12 = vadd.f32 %v1998_v38, %v3816_v17  ;;  %v2110_v13 = vsel %vm2063_vm2, %v2085_v39, %v2081_v20  ;;  %v2173_v45 = vrot.slane %v3873_v22, %v3838_v49  ;;  %v2046_v63 = vrot.slane %v3873_v22, %v3541_v56 }
 0x258   :  { %v2021_v46 = vmax.f32 %v1857_v0, %v2017_v42  ;;  %v1858_v47 = vmax.f32 %v1853_v29, %v1854_v43  ;;  %v2111_v50 = vsel %vm2065_vm3, %v2089_v61, %v2110_v13  ;;  %v2190_v51 = vsel %vm2063_vm2, %v2165_v1, %v2161_v30  ;;  %v3116_v1 = vld [vmem:[%s3978_s9 + $0x8] sm:$0xff]  }
 0x259   :  { %v2013_v52 = vmax.f32 %v2005_v44, 0.0  ;;  %v2014_v53 = vmax.f32 %v2006_v12, 0.0  ;;  %v2112_v54 = vsel %vm2067_vm4, %v2093_v40, %v2111_v50  ;;  %v2191_v14 = vsel %vm2065_vm3, %v2169_v62, %v2190_v51  ;;  %v3117_v44 = vld [vmem:[%s3978_s9 + $0x10] sm:$0xff]   ;;  %v3118_v12 = vld [vmem:[%s3978_s9 + $0x18] sm:$0xff]  }
 0x25a   :  { %v2029_v32 = vcombine.high %v2021_v46, %v2021_v46  ;;  %v2050_v17 = vrot.slane %v2021_v46, %v3541_v56  ;;  %v2097_v57 = vrot.slane %v2021_v46, %v3547_v58  ;;  %v2177_v59 = vrot.slane %v2021_v46, %v3838_v49 }
 0x25b   :  { %v2018_v2 = vmax.f32 %v2013_v52, %v2014_v53  ;;  %v2192_v3 = vsel %vm2067_vm4, %v2173_v45, %v2191_v14  ;;  %v2064_v4 = vsel %vm2063_vm2, %v2038_v60, %v2034_v18  ;;  %v2137_v55 = vrot.slane %v2021_v46, %v3835_v48  ;;  %v2755_v45 = vld [vmem:[%s3981_s8] ss:$0 sm:$0xff] }
 0x25c   :  { %v2101_v33 = vrot.slane %v2029_v32, %v3547_v58  ;;  %v2113_v5 = vsel %vm2069_vm5, %v2097_v57, %v2112_v54  ;;  %v2181_v36 = vrot.slane %v2029_v32, %v3838_v49  ;;  %v2193_v7 = vsel %vm2069_vm5, %v2177_v59, %v2192_v3 }
 0x25d   :  { %v2022_v6 = vmax.f32 %v1858_v47, %v2018_v2  ;;  %v2054_v8 = vrot.slane %v2029_v32, %v3541_v56  ;;  %v2066_v9 = vsel %vm2065_vm3, %v2042_v28, %v2064_v4  ;;  %v2133_v18 = vrot.slane %v3873_v22, %v3835_v48  ;;  %v2788_v2 = vld [vmem:[%s3982_s10] ss:$0 sm:$0xff] }
 0x25e   :  { %v2114_v10 = vsel %vm2071_vm6, %v2101_v33, %v2113_v5  ;;  %v2194_v11 = vsel %vm2071_vm6, %v2181_v36, %v2193_v7  ;;  %v2068_v15 = vsel %vm2067_vm4, %v2046_v63, %v2066_v9  ;;  %v2141_v60 = vrot.slane %v2029_v32, %v3835_v48 }
 0x25f   :  { %v2030_v20 = vcombine.high %v2022_v6, %v2022_v6  ;;  %v2105_v16 = vrot.slane %v2022_v6, %v3547_v58  ;;  %v2185_v30 = vrot.slane %v2022_v6, %v3838_v49  ;;  %v2058_v23 = vrot.slane %v2022_v6, %v3541_v56 }
 0x260   :  { %v2070_v24 = vsel %vm2069_vm5, %v2050_v17, %v2068_v15  ;;  %v2145_v26 = vrot.slane %v2022_v6, %v3835_v48  ;;  %v2150_v27 = vsel %vm2063_vm2, %v2125_v25, %v2121_v21 }
 0x261   :  { %v2109_v22 = vrot.slane %v2030_v20, %v3547_v58  ;;  %v2115_v28 = vsel %vm2073_vm7, %v2105_v16, %v2114_v10  ;;  %v2189_v61 = vrot.slane %v2030_v20, %v3838_v49  ;;  %v2195_v29 = vsel %vm2073_vm7, %v2185_v30, %v2194_v11 }
 0x262   :  { %v2062_v62 = vrot.slane %v2030_v20, %v3541_v56  ;;  %v2072_v0 = vsel %vm2071_vm6, %v2054_v8, %v2070_v24  ;;  %v2149_v31 = vrot.slane %v2030_v20, %v3835_v48  ;;  %v2151_v35 = vsel %vm2065_vm3, %v2129_v41, %v2150_v27  ;;  %v3115_v48 = vld [vmem:[%s3978_s9] sm:$0xff]  }
 0x263   :  { %v2116_v34 = vsel %vm2075_vm8, %v2109_v22, %v2115_v28  ;;  %v2196_v21 = vsel %vm2075_vm8, %v2189_v61, %v2195_v29  ;;  %v2074_v58 = vsel %vm2073_vm7, %v2058_v23, %v2072_v0  ;;  %v2152_v25 = vsel %vm2067_vm4, %v2133_v18, %v2151_v35 }
 0x264   :  { %v2199_v37 = vpack.c.bf16 %v2116_v34, %v2116_v34  ;;  %v2201_v49 = vpack.c.bf16 %v2196_v21, %v2196_v21  ;;  %v2076_v38 = vsel %vm2075_vm8, %v2062_v62, %v2074_v58  ;;  %v2153_v56 = vsel %vm2069_vm5, %v2137_v55, %v2152_v25 }
 0x265   :  { %v2198_v39 = vpack.c.bf16 %v2076_v38, %v2076_v38  ;;  %v2154_v40 = vsel %vm2071_vm6, %v2141_v60, %v2153_v56 }
 0x266   :  { %2497 = vmatprep.mubr.bf16.mxu0 %v2199_v37  ;;  %2537 = vmatprep.mubr.bf16.mxu1 %v2201_v49  ;;  %v2155_v41 = vsel %vm2073_vm7, %v2145_v26, %v2154_v40 }
 0x267   :  { %2498 = vmatmul.mubr.bf16.vlgmr.msra.gmra.mrb[24].mxu0 %v2198_v39  ;;  %v2156_v42 = vsel %vm2075_vm8, %v2149_v31, %v2155_v41 }
 0x268   :  { %v2200_v43 = vpack.c.bf16 %v2156_v42, %v2156_v42  ;;  %2844 = vmatpush3.bf16.msra.mxu0 %v3115_v48  ;;  %2851 = vmatprep.mubr.msk.bf16.mxu0 %vm3121_vm9, %v3120_v19 }
 0x269   :  { %2845 = vmatprep.subr.bf16.mxu0 %v3120_v19 }
 0x26a   :  { %2538 = vmatmul.mubr.bf16.vlgmr.msra.gmra.mrb[28].mxu1 %v2200_v43 }
 0x26c   :  { %2846 = vmatpush3.bf16.msra.mxu0 %v3116_v1 }
 0x26d   :  { %2847 = vmatprep.subr.bf16.mxu0 %v3120_v19 }
 0x270   :  { %2848 = vmatpush3.bf16.msra.mxu0 %v3117_v44 }
 0x271   :  { %2849 = vmatprep.subr.bf16.mxu0 %v3120_v19 }
 0x274   :  { %2850 = vmatpush3.bf16.msra.mxu0 %v3118_v12 }
 0x33a   :  { %v2810_v13 = vpop.f32.mrb[24].mxu0 }
 0x33b   :  { %v2811_v46 = vpop.f32.mrb[25].mxu0 }
 0x33c   :  { %v2812_v47 = vadd.f32 %v2811_v46, %v2810_v13  ;;  %v2813_v50 = vpop.f32.mrb[26].mxu0 }
 0x33d   :  { %v2832_v51 = vpop.f32.mrb[28].mxu1  ;;  %v2814_v52 = vpop.f32.mrb[27].mxu0 }
 0x33e   :  { %v2500_v53 = vadd.f32 %v2812_v47, %v2755_v45  ;;  %v2833_v54 = vpop.f32.mrb[29].mxu1 }
 0x33f   :  { %v2834_v14 = vadd.f32 %v2833_v54, %v2832_v51  ;;  %v2835_v32 = vpop.f32.mrb[30].mxu1 }
 0x340   :  { %v2836_v17 = vpop.f32.mrb[31].mxu1 }
 0x341   :  { %v2540_v57 = vadd.f32 %v2834_v14, %v2500_v53 }
 0x343   :  { %v2545_v63 = vmax.f32 %v2540_v57, 0.0 }
 0x345   :  { %v2546_v19 = vpack.c.bf16 %v2545_v63, %v2545_v63 }
 0x347   :  { %2852 = vmatmul.mubr.msk.bf16.vlgmr.msra.gmra.mrb[28].mxu0 %vm2586_vm10, %v2546_v19 }
 0x41a   :  { %v2624_v59 = vpop.f32.mrb[28].mxu0 }
 0x41b   :  { %v2625_v3 = vadd.f32 %v2788_v2, %v2624_v59  ;;  %v2853_v4 = vpop.f32.mrb[29].mxu0 }
 0x41c   :  { %v2627_v55 = vpop.f32.mrb[30].mxu0 }
 0x41d   :  { %2630 = vst [vmem:[%s3983_s11] sm:$0xff] %v2625_v3  ;;  %v2854_v33 = vpop.f32.mrb[31].mxu0 }

</bundles_post_ra>
